<compile_context>
chip_gen: v7x
topology: tpu7x:2x2x1
jax: 0.10.0
libtpu: 0.0.40
codegen_flags: <defaults>
</compile_context>

<pallas_src>
from math import sqrt

import jax
import jax.numpy as jnp
from jax import lax
from jax.experimental import pallas as pl
from jax.experimental.pallas import tpu as pltpu


# ------------------------------- Pallas kernel -------------------------------

def _temporal_attention_kernel(xa_ref, x_ref, u1_ref, u3_ref, ve_ref, be_ref,
                               o_ref):
    """Fully fused temporal-attention forward for one batch element.

    Per-batch block shapes (D = N = F_in = T):
      xa : (1, T, N, F)   x permuted to (b, t, n, f)
      x  : (1, N, F, T)   original layout
      u1 : (F, N)  u3 : (F, T)  ve : (T, T)  be : (T, T)
      o  : (1, T, N, F)
    """
    xa = xa_ref[0].astype(jnp.float32)          # (T, N, F)
    xb = x_ref[0].astype(jnp.float32)           # (N, F, T)
    u1 = u1_ref[...].astype(jnp.float32)
    u3 = u3_ref[...].astype(jnp.float32)
    ve = ve_ref[...].astype(jnp.float32)
    be = be_ref[...].astype(jnp.float32)
    T, N, F = xa.shape

    # lhs[t, n, m] = sum_f x[n, f, t] * U1[f, m]   -- one (T*N, F) x (F, N) MXU matmul
    lhs = jnp.dot(xa.reshape(T * N, F), u1,
                  preferred_element_type=jnp.float32).reshape(T, N, N)

    # rhs[n, f, j] = sum_t x[n, f, t] * U3[t, j]   -- one (N*F, T) x (T, T) MXU matmul
    rhs = jnp.dot(xb.reshape(N * F, T), u3,
                  preferred_element_type=jnp.float32).reshape(N, F, T)

    # product[q, n, f] = sum_m lhs[q, n, m] * rhs[q, f, m]
    # (batched over q: batch dim 0, contract last dims -> native MXU pattern)
    product = lax.dot_general(
        lhs, rhs,
        dimension_numbers=(((2,), (2,)), ((0,), (0,))),
        preferred_element_type=jnp.float32)      # (T, N, F)

    s = jax.nn.sigmoid(product + be[None, :, :])

    # e[q, i, f] = sum_n Ve[i, n] * s[q, n, f]
    ve_b = jnp.broadcast_to(ve[None, :, :], (T, T, T))
    e = lax.dot_general(
        ve_b, s,
        dimension_numbers=(((2,), (1,)), ((0,), (0,))),
        preferred_element_type=jnp.float32)      # (T, N, F)

    # softmax over torch dim=2 (the N / "i" axis) == axis 1 of the per-batch tile
    e_max = jnp.max(e, axis=1, keepdims=True)
    p = jnp.exp(e - e_max)
    out = p / jnp.sum(p, axis=1, keepdims=True)

    o_ref[0] = out.astype(o_ref.dtype)


# --------------------------------- wrapper -----------------------------------

def temporal_attention_forward(x, params):
    """x: (B, N, F_in, T) with N == F_in == T (required by the module's matmuls)."""
    B, N, F, T = x.shape
    assert N == F == T, "torch forward only type-checks when N == F_in == T"
    D = T

    # Layout plumbing done once in XLA so the kernel needs no transposes.
    xa = jnp.transpose(x, (0, 3, 1, 2))          # (B, T, N, F)
    be2d = params['be'][0]                       # (T, T)  == be.squeeze(0)

    return pl.pallas_call(
        _temporal_attention_kernel,
        out_shape=jax.ShapeDtypeStruct((B, D, D, D), x.dtype),
        grid_spec=pltpu.PrefetchScalarGridSpec(
            num_scalar_prefetch=0,
            grid=(B,),
            in_specs=[
                pl.BlockSpec((1, D, D, D), lambda b: (b, 0, 0, 0)),  # xa
                pl.BlockSpec((1, D, D, D), lambda b: (b, 0, 0, 0)),  # x
                pl.BlockSpec((D, D), lambda b: (0, 0)),              # U1
                pl.BlockSpec((D, D), lambda b: (0, 0)),              # U3
                pl.BlockSpec((D, D), lambda b: (0, 0)),              # Ve
                pl.BlockSpec((D, D), lambda b: (0, 0)),              # be
            ],
            out_specs=pl.BlockSpec((1, D, D, D), lambda b: (b, 0, 0, 0)),
        ),
        compiler_params=pltpu.CompilerParams(
            dimension_semantics=("parallel",)),   # batch axis -> both TCs on v7x
    )(xa, x, params['U1'], params['U3'], params['Ve'], be2d)


# --------------------------- deterministic params ----------------------------

def _xavier_uniform(key, shape):
    fan_in, fan_out = shape[-2], shape[-1]
    bound = sqrt(6.0 / (fan_in + fan_out))
    return jax.random.uniform(key, shape, jnp.float32, -bound, bound)


def init_params(key, in_channels, num_of_vertices, num_of_timesteps):
    k1, k2, k3, k4 = jax.random.split(key, 4)
    return {
        'U1': _xavier_uniform(k1, (in_channels, num_of_vertices)),
        # U2 exists in the torch module but is never used in forward.
        'U2': _xavier_uniform(k2, (num_of_vertices, num_of_timesteps)),
        'U3': _xavier_uniform(k3, (in_channels, num_of_timesteps)),
        'be': jnp.zeros((1, num_of_timesteps, num_of_timesteps), jnp.float32),
        'Ve': _xavier_uniform(k4, (num_of_timesteps, num_of_timesteps)),
    }


# ----------------------------- pure-JAX reference ----------------------------

def reference_forward(x, params):
    U1, U3, Ve, be = params['U1'], params['U3'], params['Ve'], params['be']
    x1 = jnp.transpose(x, (0, 1, 3, 2))                              # (B, N, T, F)
    lhs = jnp.matmul(jnp.transpose(x1, (0, 2, 1, 3)), U1)            # (B, T, N, N)
    rhs = jnp.matmul(jnp.transpose(x1, (0, 1, 3, 2)), U3)            # (B, N, F, T)
    product = jnp.matmul(lhs, jnp.transpose(rhs, (0, 1, 3, 2)))      # (B, T, N, F)
    e = jnp.matmul(Ve, jax.nn.sigmoid(product + be[0]))              # (B, T, N, F)
    return jax.nn.softmax(e, axis=2)


# ----------------------------------- main -------------------------------------

if __name__ == "__main__":
    B = 2
    D = 16   # in_channels == num_of_vertices == num_of_timesteps (module requirement)

    key = jax.random.PRNGKey(0)
    kx, kp = jax.random.split(key)
    x = jax.random.normal(kx, (B, D, D, D), jnp.float32)   # (B, N, F_in, T)
    params = init_params(kp, D, D, D)

    fwd = jax.jit(temporal_attention_forward)
    out = fwd(x, params)
    jax.block_until_ready(out)

    ref = reference_forward(x, params)
    assert out.shape == (B, D, D, D), out.shape
    # Tolerance covers MXU default-precision vs XLA reference matmul precision;
    # outputs are softmax probabilities in [0, 1].
    max_diff = float(jnp.max(jnp.abs(out - ref)))
    assert max_diff < 2e-2, f"mismatch vs reference: max |diff| = {max_diff}"

    print("KERNEL_OK")
</pallas_src>

<mosaic_0001>
module attributes {stable_mosaic.version = 11 : i64} {
  func.func @_temporal_attention_kernel(%arg0: i32, %arg1: memref<1x16x16x16xf32, #tpu.memory_space<vmem>>, %arg2: memref<1x16x16x16xf32, #tpu.memory_space<vmem>>, %arg3: memref<16x16xf32, #tpu.memory_space<vmem>>, %arg4: memref<16x16xf32, #tpu.memory_space<vmem>>, %arg5: memref<16x16xf32, #tpu.memory_space<vmem>>, %arg6: memref<16x16xf32, #tpu.memory_space<vmem>>, %arg7: memref<1x16x16x16xf32, #tpu.memory_space<vmem>>) attributes {dimension_semantics = [#tpu.dimension_semantics<parallel>], iteration_bounds = array<i64: 2>, scalar_prefetch = 0 : i64, scratch_operands = 0 : i64, tpu.core_type = #tpu.core_type<tc>, window_params = [{transform_indices = @transform_0, window_bounds = array<i64: 1, 16, 16, 16>}, {transform_indices = @transform_1, window_bounds = array<i64: 1, 16, 16, 16>}, {pipeline_mode = #tpu.pipeline_mode<synchronous>, transform_indices = @transform_2, window_bounds = array<i64: 16, 16>}, {pipeline_mode = #tpu.pipeline_mode<synchronous>, transform_indices = @transform_3, window_bounds = array<i64: 16, 16>}, {pipeline_mode = #tpu.pipeline_mode<synchronous>, transform_indices = @transform_4, window_bounds = array<i64: 16, 16>}, {pipeline_mode = #tpu.pipeline_mode<synchronous>, transform_indices = @transform_5, window_bounds = array<i64: 16, 16>}, {transform_indices = @transform_6, window_bounds = array<i64: 1, 16, 16, 16>}]} {
    %c0 = arith.constant 0 : index
    %c0_0 = arith.constant 0 : index
    %c0_1 = arith.constant 0 : index
    %c0_2 = arith.constant 0 : index
    %0 = vector.load %arg1[%c0, %c0_0, %c0_1, %c0_2] : memref<1x16x16x16xf32, #tpu.memory_space<vmem>>, vector<1x16x16x16xf32>
    %1 = vector.shape_cast %0 : vector<1x16x16x16xf32> to vector<16x16x16xf32>
    %c0_3 = arith.constant 0 : index
    %c0_4 = arith.constant 0 : index
    %c0_5 = arith.constant 0 : index
    %c0_6 = arith.constant 0 : index
    %2 = vector.load %arg2[%c0_3, %c0_4, %c0_5, %c0_6] : memref<1x16x16x16xf32, #tpu.memory_space<vmem>>, vector<1x16x16x16xf32>
    %3 = vector.shape_cast %2 : vector<1x16x16x16xf32> to vector<16x16x16xf32>
    %c0_7 = arith.constant 0 : index
    %c0_8 = arith.constant 0 : index
    %4 = vector.load %arg3[%c0_7, %c0_8] : memref<16x16xf32, #tpu.memory_space<vmem>>, vector<16x16xf32>
    %c0_9 = arith.constant 0 : index
    %c0_10 = arith.constant 0 : index
    %5 = vector.load %arg4[%c0_9, %c0_10] : memref<16x16xf32, #tpu.memory_space<vmem>>, vector<16x16xf32>
    %c0_11 = arith.constant 0 : index
    %c0_12 = arith.constant 0 : index
    %6 = vector.load %arg5[%c0_11, %c0_12] : memref<16x16xf32, #tpu.memory_space<vmem>>, vector<16x16xf32>
    %c0_13 = arith.constant 0 : index
    %c0_14 = arith.constant 0 : index
    %7 = vector.load %arg6[%c0_13, %c0_14] : memref<16x16xf32, #tpu.memory_space<vmem>>, vector<16x16xf32>
    %8 = vector.shape_cast %1 : vector<16x16x16xf32> to vector<256x16xf32>
    %cst = arith.constant dense<0.000000e+00> : vector<256x16xf32>
    %9 = tpu.matmul %8, %4, %cst {dimension_numbers = #tpu.dot_dimension_numbers<[1], [0], [0], [1], [0, 0, 1, 1], [], []>} : vector<256x16xf32>, vector<16x16xf32>, vector<256x16xf32> -> vector<256x16xf32>
    %10 = vector.shape_cast %9 : vector<256x16xf32> to vector<16x16x16xf32>
    %11 = vector.shape_cast %3 : vector<16x16x16xf32> to vector<256x16xf32>
    %cst_15 = arith.constant dense<0.000000e+00> : vector<256x16xf32>
    %12 = tpu.matmul %11, %5, %cst_15 {dimension_numbers = #tpu.dot_dimension_numbers<[1], [0], [0], [1], [0, 0, 1, 1], [], []>} : vector<256x16xf32>, vector<16x16xf32>, vector<256x16xf32> -> vector<256x16xf32>
    %13 = vector.shape_cast %12 : vector<256x16xf32> to vector<16x16x16xf32>
    %cst_16 = arith.constant dense<0.000000e+00> : vector<16x16x16xf32>
    %14 = tpu.matmul %10, %13, %cst_16 {dimension_numbers = #tpu.dot_dimension_numbers<[2], [2], [1], [1], [0, 0, 0, 1, 1, 1], [0], [0]>} : vector<16x16x16xf32>, vector<16x16x16xf32>, vector<16x16x16xf32> -> vector<16x16x16xf32>
    %15 = vector.shape_cast %7 : vector<16x16xf32> to vector<1x16x16xf32>
    %16 = vector.broadcast %15 : vector<1x16x16xf32> to vector<16x16x16xf32>
    %17 = arith.addf %14, %16 : vector<16x16x16xf32>
    %18 = arith.negf %17 : vector<16x16x16xf32>
    %19 = math.exp %18 : vector<16x16x16xf32>
    %cst_17 = arith.constant 1.000000e+00 : f32
    %20 = vector.broadcast %cst_17 : f32 to vector<16x16x16xf32>
    %21 = arith.addf %20, %19 : vector<16x16x16xf32>
    %22 = arith.divf %20, %21 : vector<16x16x16xf32>
    %23 = vector.shape_cast %6 : vector<16x16xf32> to vector<1x16x16xf32>
    %24 = vector.shape_cast %23 : vector<1x16x16xf32> to vector<1x16x16xf32>
    %25 = vector.broadcast %24 : vector<1x16x16xf32> to vector<16x16x16xf32>
    %cst_18 = arith.constant dense<0.000000e+00> : vector<16x16x16xf32>
    %26 = tpu.matmul %25, %22, %cst_18 {dimension_numbers = #tpu.dot_dimension_numbers<[2], [1], [1], [2], [0, 0, 0, 1, 1, 2], [0], [0]>} : vector<16x16x16xf32>, vector<16x16x16xf32>, vector<16x16x16xf32> -> vector<16x16x16xf32>
    %cst_19 = arith.constant dense<0xFF800000> : vector<16x16xf32>
    %27 = vector.multi_reduction <maximumf>, %26, %cst_19 [1] : vector<16x16x16xf32> to vector<16x16xf32>
    %28 = vector.shape_cast %27 : vector<16x16xf32> to vector<16x1x16xf32>
    %29 = vector.broadcast %28 : vector<16x1x16xf32> to vector<16x16x16xf32>
    %30 = arith.subf %26, %29 : vector<16x16x16xf32>
    %31 = math.exp %30 : vector<16x16x16xf32>
    %cst_20 = arith.constant dense<0.000000e+00> : vector<16x16xf32>
    %32 = vector.multi_reduction <add>, %31, %cst_20 [1] : vector<16x16x16xf32> to vector<16x16xf32>
    %33 = vector.shape_cast %32 : vector<16x16xf32> to vector<16x1x16xf32>
    %34 = vector.broadcast %33 : vector<16x1x16xf32> to vector<16x16x16xf32>
    %35 = arith.divf %31, %34 : vector<16x16x16xf32>
    %c0_21 = arith.constant 0 : index
    %c0_22 = arith.constant 0 : index
    %c0_23 = arith.constant 0 : index
    %c0_24 = arith.constant 0 : index
    %36 = vector.load %arg7[%c0_21, %c0_22, %c0_23, %c0_24] : memref<1x16x16x16xf32, #tpu.memory_space<vmem>>, vector<1x16x16x16xf32>
    %37 = vector.shape_cast %36 : vector<1x16x16x16xf32> to vector<16x16x16xf32>
    %38 = vector.shape_cast %35 : vector<16x16x16xf32> to vector<1x16x16x16xf32>
    tpu.vector_store %arg7[%c0_21, %c0_22, %c0_23, %c0_24], %38 {strides = array<i32>} : memref<1x16x16x16xf32, #tpu.memory_space<vmem>>, vector<1x16x16x16xf32>,
    return
  }
  func.func @transform_0(%arg0: i32) -> (i32, i32, i32, i32) {
    %c0_i32 = arith.constant 0 : i32
    %c0_i32_0 = arith.constant 0 : i32
    %c0_i32_1 = arith.constant 0 : i32
    %c0_i32_2 = arith.constant 0 : i32
    return %arg0, %c0_i32, %c0_i32_0, %c0_i32_1 : i32, i32, i32, i32
  }
  func.func @transform_1(%arg0: i32) -> (i32, i32, i32, i32) {
    %c0_i32 = arith.constant 0 : i32
    %c0_i32_0 = arith.constant 0 : i32
    %c0_i32_1 = arith.constant 0 : i32
    %c0_i32_2 = arith.constant 0 : i32
    return %arg0, %c0_i32, %c0_i32_0, %c0_i32_1 : i32, i32, i32, i32
  }
  func.func @transform_2(%arg0: i32) -> (i32, i32) {
    %c0_i32 = arith.constant 0 : i32
    %c0_i32_0 = arith.constant 0 : i32
    %c0_i32_1 = arith.constant 0 : i32
    return %c0_i32, %c0_i32_0 : i32, i32
  }
  func.func @transform_3(%arg0: i32) -> (i32, i32) {
    %c0_i32 = arith.constant 0 : i32
    %c0_i32_0 = arith.constant 0 : i32
    %c0_i32_1 = arith.constant 0 : i32
    return %c0_i32, %c0_i32_0 : i32, i32
  }
  func.func @transform_4(%arg0: i32) -> (i32, i32) {
    %c0_i32 = arith.constant 0 : i32
    %c0_i32_0 = arith.constant 0 : i32
    %c0_i32_1 = arith.constant 0 : i32
    return %c0_i32, %c0_i32_0 : i32, i32
  }
  func.func @transform_5(%arg0: i32) -> (i32, i32) {
    %c0_i32 = arith.constant 0 : i32
    %c0_i32_0 = arith.constant 0 : i32
    %c0_i32_1 = arith.constant 0 : i32
    return %c0_i32, %c0_i32_0 : i32, i32
  }
  func.func @transform_6(%arg0: i32) -> (i32, i32, i32, i32) {
    %c0_i32 = arith.constant 0 : i32
    %c0_i32_0 = arith.constant 0 : i32
    %c0_i32_1 = arith.constant 0 : i32
    %c0_i32_2 = arith.constant 0 : i32
    return %arg0, %c0_i32, %c0_i32_0, %c0_i32_1 : i32, i32, i32, i32
  }
}

</mosaic_0001>

<bundles_post_ra>
// kernel: temporal_attention_forward.1
= control target key start
LH: loop header
LB: loop body
LE: loop exit
PB: predicated region body
PF: predicated region fallthrough
CT: control target
= control target key end

     0   :  { %11 = vsyncpa [#allocation3], 0  ;;  %s6417_s0 = inlined_call_operand.vmem [shape: f32[2,16,16,16], index: 0, kind: input, shape index: {}]   ;;  %s6418_s1 = inlined_call_operand.vmem [shape: f32[2,16,16,16], index: 1, kind: input, shape index: {}]   ;;  %s6419_s2 = inlined_call_operand.vmem [shape: f32[16,16], index: 2, kind: input, shape index: {}]   ;;  %s6420_s3 = inlined_call_operand.vmem [shape: f32[16,16], index: 3, kind: input, shape index: {}]   ;;  %s6421_s4 = inlined_call_operand.vmem [shape: f32[16,16], index: 4, kind: input, shape index: {}]   ;;  %s6422_s5 = inlined_call_operand.vmem [shape: f32[16,16], index: 5, kind: input, shape index: {}]   ;;  %s6423_s6 = inlined_call_operand.hbm [shape: f32[2,16,16,16], index: 6, kind: output, shape index: {}]  }
   0x1   :  { %13 = vsyncpa [#allocation3 + $0x1], 0  ;;  %s5595_s21 = smov 0   ;;  %s5597_s22 = smov 0  }
   0x2   :  { %s5599_s23 = smov 0   ;;  %s5601_s24 = smov 0  }
   0x3 LB: > { %s5616_s25 = sadd.s32 4294967295, %s5555_s24   ;;  %s4327_s26 = sadd.s32 4294967294, %s5555_s24   ;;  %s5555_s24 = sphi %s5601_s24, %s6431_s24   ;;  %s5551_s23 = sphi %s5599_s23, %s6430_s23   ;;  %s5547_s22 = sphi %s5597_s22, %s6429_s22   ;;  %s5543_s21 = sphi %s5595_s21, %s6428_s21  }
   0x4   : > { %s5620_s27 = sadd.s32 1, %s5555_s24   ;;  %s162_s28 = sadd.s32 1, %s5551_s23 }
   0x5   : > { %s159_s29 = ssub.s32 %s5555_s24, %s5620_s27  ;;  %p172_p0 = scmp.ne.s32.totalorder %s5551_s23, %s5547_s22 }
   0x6   : > { %p160_p1 = scmp.eq.s32.totalorder %s159_s29, 0  ;;  %p173_p2 = scmp.eq.s32.totalorder %s5616_s25, 1 }
   0x7   : > { %p178_p3 = scmp.ne.s32.totalorder %s5547_s22, %s5543_s21  ;;  %p179_p4 = scmp.eq.s32.totalorder %s4327_s26, 1 }
   0x8   : > { %s5631_s30 = scalar_select %p160_p1, %s5551_s23, %s162_s28  }
   0x9   : > { %p5633_p5 = por %p173_p2, %p172_p0  ;;  %p5637_p6 = por %p179_p4, %p178_p3 }
   0xa   : > { %p4330_p7 = scmp.ge.s32.totalorder %s5555_s24, 1  ;;  %p225_p8 = scmp.lt.s32.totalorder %s5555_s24, 3 }
   0xc   : > { %p226_p9 = pnand %p4330_p7, %p225_p8 }
   0xd   : > { %v336_v0 = vld [vmem:[%s6420_s3] sm:$0xff] (!%p226_p9)  ;;  %v337_v1 = vld [vmem:[%s6420_s3 + $0x8] sm:$0xff] (!%p226_p9)  ;;  %p260_p10 = scmp.lt.s32.totalorder (!%p226_p9), %s5616_s25, 1  ;;  %vm342_vm0 = vcmask (!%p226_p9), 130048   ;;  %s5557_s12 = smov (!%p226_p9), [#allocation2]  }
   0xe   : > { %229 = sbr.rel (%p226_p9) target bundleno = 877 (0x36d), region = 44  ;;  %v334_v2 = vld [vmem:[%s6419_s2] sm:$0xff] (!%p226_p9)  ;;  %v5064_v3 = vpack.c.bf16 (!%p226_p9), %v337_v1, %v336_v0  ;;  %v335_v4 = vld [vmem:[%s6419_s2 + $0x8] sm:$0xff] (!%p226_p9)  ;;  %vm5797_vm1 = vmpackc.low (!%p226_p9), %vm342_vm0, %vm342_vm0  ;;  %s5497_s13 = sshll.u32 (!%p226_p9), %s5557_s12, 4  ;;  %s5498_s13 = int_to_ptr.vmem [resolvable:$false] %s5497_s13 }
   0xf   : > { %v5060_v5 = vpack.c.bf16 (!%p226_p9), %v335_v4, %v334_v2  ;;  %s5499_s14 = scalar_lea.vmem (!%p226_p9), %s5498_s13, 8192 }
  0x10   : > { %5065 = vmatprep.subr.bf16.mxu1 (!%p226_p9), %v5064_v3 }
  0x11   : > { %5067 = vmatpush3.bf16.msra.mxu1 (!%p226_p9), %v5064_v3  ;;  %5061 = vmatprep.subr.bf16.mxu0 (!%p226_p9), %v5060_v5 }
  0x12   : > { %5063 = vmatpush3.bf16.msra.mxu0 (!%p226_p9), %v5060_v5 }
  0x15   : > { %s261_s17 = scalar_select %p260_p10, %s5616_s25, 1 }
  0x17   : > { %s4533_s18 = sshll.u32 %s261_s17, 8 }
  0x18   : > { %s5660_s26 = scalar_lea.vmem %s6418_s1, %s4533_s18  ;;  %s5665_s9 = scalar_lea.vmem %s6417_s0, %s4533_s18 }
  0x19   : > { %v302_v6 = vld [vmem:[%s5660_s26] sm:$0xff]  ;;  %v303_v7 = vld [vmem:[%s5660_s26 + $0x8] sm:$0xff]  ;;  %v304_v8 = vld [vmem:[%s5660_s26 + $0x10] sm:$0xff]  ;;  %s257_s18 = sand.u32 1, %s5547_s22  }
  0x1a   : > { %4788 = vmatprep.mubr.msk.f32.mxu1 %vm342_vm0, %v302_v6  ;;  %v270_v9 = vld [vmem:[%s5665_s9] sm:$0xff]  ;;  %v271_v10 = vld [vmem:[%s5665_s9 + $0x8] sm:$0xff]  ;;  %v305_v11 = vld [vmem:[%s5660_s26 + $0x18] sm:$0xff]  ;;  %s6143_s19 = sshll.u32 %s257_s18, 8 }
  0x1b   : > { %4789 = vmatmul.mubr.msk.f32.vlgmr.msra.gmra.mrb[0].mxu1 %vm342_vm0, %v303_v7  ;;  %4736 = vmatprep.mubr.msk.f32.mxu0 %vm342_vm0, %v270_v9  ;;  %v272_v12 = vld [vmem:[%s5665_s9 + $0x10] sm:$0xff]  ;;  %v306_v13 = vld [vmem:[%s5660_s26 + $0x20] sm:$0xff]  ;;  %v273_v14 = vld [vmem:[%s5665_s9 + $0x18] sm:$0xff]  ;;  %s6165_s20 = scalar_lea.vmem [#allocation2], %s6143_s19 }
  0x1c   : > { %4791 = vmatprep.mubr.msk.f32.mxu1 %vm342_vm0, %v304_v8  ;;  %4737 = vmatmul.mubr.msk.f32.vlgmr.msra.gmra.mrb[0].mxu0 %vm342_vm0, %v271_v10  ;;  %v274_v15 = vld [vmem:[%s5665_s9 + $0x20] sm:$0xff]  ;;  %v307_v16 = vld [vmem:[%s5660_s26 + $0x28] sm:$0xff]  ;;  %v308_v17 = vld [vmem:[%s5660_s26 + $0x30] sm:$0xff]  ;;  %s4253_s28 = sshll.u32 %s6165_s20, 4  ;;  %s6368_s28 = int_to_ptr.vmem [resolvable:$true] %s4253_s28 }
  0x1d   : > { %4739 = vmatprep.mubr.msk.f32.mxu0 %vm342_vm0, %v272_v12  ;;  %v275_v18 = vld [vmem:[%s5665_s9 + $0x28] sm:$0xff]  ;;  %v276_v19 = vld [vmem:[%s5665_s9 + $0x30] sm:$0xff]  ;;  %v309_v20 = vld [vmem:[%s5660_s26 + $0x38] sm:$0xff]  ;;  %s5493_s11 = scalar_lea.vmem %s6368_s28, 4096  ;;  %p5500_p0 = scmp.lt.s32.totalorder %s6368_s28, %s5498_s13 }
  0x1e   : > { %v310_v21 = vld [vmem:[%s5660_s26 + $0x40] sm:$0xff]  ;;  %v277_v22 = vld [vmem:[%s5665_s9 + $0x38] sm:$0xff]  ;;  %v311_v24 = vld [vmem:[%s5660_s26 + $0x48] sm:$0xff]  ;;  %p5494_p11 = scmp.ne.s32.totalorder %s6368_s28, %s5493_s11  ;;  %p5501_p1 = scmp.lt.s32.totalorder %s5499_s14, %s5493_s11 }
  0x1f   : > { %4792 = vmatmul.mubr.msk.f32.gmra.mrb[2].mxu1 %vm342_vm0, %v305_v11  ;;  %v278_v23 = vld [vmem:[%s5665_s9 + $0x40] sm:$0xff]  ;;  %v312_v25 = vld [vmem:[%s5660_s26 + $0x50] sm:$0xff]  ;;  %v279_v26 = vld [vmem:[%s5665_s9 + $0x48] sm:$0xff] }
  0x20   : > { %4794 = vmatprep.mubr.msk.f32.mxu1 %vm342_vm0, %v306_v13  ;;  %4740 = vmatmul.mubr.msk.f32.gmra.mrb[2].mxu0 %vm342_vm0, %v273_v14  ;;  %v280_v27 = vld [vmem:[%s5665_s9 + $0x50] sm:$0xff]  ;;  %v313_v28 = vld [vmem:[%s5660_s26 + $0x58] sm:$0xff]  ;;  %v314_v29 = vld [vmem:[%s5660_s26 + $0x60] sm:$0xff]  ;;  %p5495_p12 = pnand %p5494_p11, %p5633_p5  ;;  %p5502_p2 = por %p5501_p1, %p5500_p0 }
  0x21   : > { %4742 = vmatprep.mubr.msk.f32.mxu0 %vm342_vm0, %v274_v15  ;;  %v281_v30 = vld [vmem:[%s5665_s9 + $0x58] sm:$0xff]  ;;  %v282_v31 = vld [vmem:[%s5665_s9 + $0x60] sm:$0xff]  ;;  %v315_v32 = vld [vmem:[%s5660_s26 + $0x68] sm:$0xff] }
  0x22   : > { %v316_v33 = vld [vmem:[%s5660_s26 + $0x70] sm:$0xff]  ;;  %v283_v34 = vld [vmem:[%s5665_s9 + $0x68] sm:$0xff]  ;;  %v317_v36 = vld [vmem:[%s5660_s26 + $0x78] sm:$0xff]  ;;  %p5496_p13 = pneg %p5495_p12 }
  0x23   : > { %4795 = vmatmul.mubr.msk.f32.gmra.mrb[4].mxu1 %vm342_vm0, %v307_v16  ;;  %v284_v35 = vld [vmem:[%s5665_s9 + $0x70] sm:$0xff]  ;;  %v318_v37 = vld [vmem:[%s5660_s26 + $0x80] sm:$0xff]  ;;  %v285_v38 = vld [vmem:[%s5665_s9 + $0x78] sm:$0xff] }
  0x24   : > { %4797 = vmatprep.mubr.msk.f32.mxu1 %vm342_vm0, %v308_v17  ;;  %4743 = vmatmul.mubr.msk.f32.gmra.mrb[4].mxu0 %vm342_vm0, %v275_v18  ;;  %v286_v39 = vld [vmem:[%s5665_s9 + $0x80] sm:$0xff]  ;;  %v319_v40 = vld [vmem:[%s5660_s26 + $0x88] sm:$0xff]  ;;  %v320_v41 = vld [vmem:[%s5660_s26 + $0x90] sm:$0xff]  ;;  %p5503_p3 = pnand %p5502_p2, %p5496_p13 }
  0x25   : > { %4745 = vmatprep.mubr.msk.f32.mxu0 %vm342_vm0, %v276_v19  ;;  %v287_v42 = vld [vmem:[%s5665_s9 + $0x88] sm:$0xff]  ;;  %v288_v43 = vld [vmem:[%s5665_s9 + $0x90] sm:$0xff]  ;;  %v321_v44 = vld [vmem:[%s5660_s26 + $0x98] sm:$0xff] }
  0x26   : > { %v322_v45 = vld [vmem:[%s5660_s26 + $0xa0] sm:$0xff]  ;;  %v289_v46 = vld [vmem:[%s5665_s9 + $0x98] sm:$0xff]  ;;  %v323_v48 = vld [vmem:[%s5660_s26 + $0xa8] sm:$0xff] }
  0x27   : > { %4798 = vmatmul.mubr.msk.f32.gmra.mrb[6].mxu1 %vm342_vm0, %v309_v20  ;;  %v290_v47 = vld [vmem:[%s5665_s9 + $0xa0] sm:$0xff]  ;;  %v324_v49 = vld [vmem:[%s5660_s26 + $0xb0] sm:$0xff]  ;;  %v291_v50 = vld [vmem:[%s5665_s9 + $0xa8] sm:$0xff] }
  0x28   : > { %4800 = vmatprep.mubr.msk.f32.mxu1 %vm342_vm0, %v310_v21  ;;  %4746 = vmatmul.mubr.msk.f32.gmra.mrb[6].mxu0 %vm342_vm0, %v277_v22  ;;  %v292_v51 = vld [vmem:[%s5665_s9 + $0xb0] sm:$0xff]  ;;  %v325_v52 = vld [vmem:[%s5660_s26 + $0xb8] sm:$0xff]  ;;  %v326_v53 = vld [vmem:[%s5660_s26 + $0xc0] sm:$0xff] }
  0x29   : > { %4748 = vmatprep.mubr.msk.f32.mxu0 %vm342_vm0, %v278_v23  ;;  %v293_v54 = vld [vmem:[%s5665_s9 + $0xb8] sm:$0xff]  ;;  %v294_v55 = vld [vmem:[%s5665_s9 + $0xc0] sm:$0xff]  ;;  %v327_v56 = vld [vmem:[%s5660_s26 + $0xc8] sm:$0xff] }
  0x2a   : > { %v328_v57 = vld [vmem:[%s5660_s26 + $0xd0] sm:$0xff]  ;;  %v295_v58 = vld [vmem:[%s5665_s9 + $0xc8] sm:$0xff]  ;;  %v329_v60 = vld [vmem:[%s5660_s26 + $0xd8] sm:$0xff] }
  0x2b   : > { %4801 = vmatmul.mubr.msk.f32.gmra.mrb[8].mxu1 %vm342_vm0, %v311_v24  ;;  %v296_v59 = vld [vmem:[%s5665_s9 + $0xd0] sm:$0xff]  ;;  %v330_v61 = vld [vmem:[%s5660_s26 + $0xe0] sm:$0xff]  ;;  %v297_v62 = vld [vmem:[%s5665_s9 + $0xd8] sm:$0xff] }
  0x2c   : > { %4803 = vmatprep.mubr.msk.f32.mxu1 %vm342_vm0, %v312_v25  ;;  %4749 = vmatmul.mubr.msk.f32.gmra.mrb[8].mxu0 %vm342_vm0, %v279_v26  ;;  %v298_v63 = vld [vmem:[%s5665_s9 + $0xe0] sm:$0xff]  ;;  %v331_v0 = vld [vmem:[%s5660_s26 + $0xe8] sm:$0xff]  ;;  %v332_v1 = vld [vmem:[%s5660_s26 + $0xf0] sm:$0xff] }
  0x2d   : > { %4751 = vmatprep.mubr.msk.f32.mxu0 %vm342_vm0, %v280_v27  ;;  %v299_v2 = vld [vmem:[%s5665_s9 + $0xe8] sm:$0xff]  ;;  %v300_v3 = vld [vmem:[%s5665_s9 + $0xf0] sm:$0xff]  ;;  %v333_v4 = vld [vmem:[%s5660_s26 + $0xf8] sm:$0xff]  ;;  %s4535_s26 = sshll.u32 %s5616_s25, 12  ;;  %s6376_s25 = scalar_lea.sflag [#allocation3], %s257_s18 }
  0x2e   : > { %v301_v5 = vld [vmem:[%s5665_s9 + $0xf8] sm:$0xff]  ;;  %v5909_v8 = vld [vmem:[%s6422_s5 + $0x8] sm:$0xff]  ;;  %s6366_s10 = scalar_lea.hbm %s6423_s6, %s4535_s26 }
  0x2f   : > { %4804 = vmatmul.mubr.msk.f32.gmra.mrb[10].mxu1 %vm342_vm0, %v313_v28 }
  0x30   : > { %4806 = vmatprep.mubr.msk.f32.mxu1 %vm342_vm0, %v314_v29  ;;  %4752 = vmatmul.mubr.msk.f32.gmra.mrb[10].mxu0 %vm342_vm0, %v281_v30 }
  0x31   : > { %4754 = vmatprep.mubr.msk.f32.mxu0 %vm342_vm0, %v282_v31 }
  0x33   : > { %4807 = vmatmul.mubr.msk.f32.gmra.mrb[12].mxu1 %vm342_vm0, %v315_v32 }
  0x34   : > { %4809 = vmatprep.mubr.msk.f32.mxu1 %vm342_vm0, %v316_v33  ;;  %4755 = vmatmul.mubr.msk.f32.gmra.mrb[12].mxu0 %vm342_vm0, %v283_v34 }
  0x35   : > { %4757 = vmatprep.mubr.msk.f32.mxu0 %vm342_vm0, %v284_v35 }
  0x37   : > { %4810 = vmatmul.mubr.msk.f32.gmra.mrb[14].mxu1 %vm342_vm0, %v317_v36 }
  0x38   : > { %4812 = vmatprep.mubr.msk.f32.mxu1 %vm342_vm0, %v318_v37  ;;  %4758 = vmatmul.mubr.msk.f32.gmra.mrb[14].mxu0 %vm342_vm0, %v285_v38 }
  0x39   : > { %4760 = vmatprep.mubr.msk.f32.mxu0 %vm342_vm0, %v286_v39 }
  0x3b   : > { %4813 = vmatmul.mubr.msk.f32.gmra.mrb[16].mxu1 %vm342_vm0, %v319_v40 }
  0x3c   : > { %4815 = vmatprep.mubr.msk.f32.mxu1 %vm342_vm0, %v320_v41  ;;  %4761 = vmatmul.mubr.msk.f32.gmra.mrb[16].mxu0 %vm342_vm0, %v287_v42 }
  0x3d   : > { %4763 = vmatprep.mubr.msk.f32.mxu0 %vm342_vm0, %v288_v43 }
  0x3f   : > { %4816 = vmatmul.mubr.msk.f32.gmra.mrb[18].mxu1 %vm342_vm0, %v321_v44 }
  0x40   : > { %4818 = vmatprep.mubr.msk.f32.mxu1 %vm342_vm0, %v322_v45  ;;  %4764 = vmatmul.mubr.msk.f32.gmra.mrb[18].mxu0 %vm342_vm0, %v289_v46 }
  0x41   : > { %4766 = vmatprep.mubr.msk.f32.mxu0 %vm342_vm0, %v290_v47 }
  0x43   : > { %4819 = vmatmul.mubr.msk.f32.gmra.mrb[20].mxu1 %vm342_vm0, %v323_v48 }
  0x44   : > { %4821 = vmatprep.mubr.msk.f32.mxu1 %vm342_vm0, %v324_v49  ;;  %4767 = vmatmul.mubr.msk.f32.gmra.mrb[20].mxu0 %vm342_vm0, %v291_v50 }
  0x45   : > { %4769 = vmatprep.mubr.msk.f32.mxu0 %vm342_vm0, %v292_v51 }
  0x47   : > { %4822 = vmatmul.mubr.msk.f32.gmra.mrb[22].mxu1 %vm342_vm0, %v325_v52 }
  0x48   : > { %4824 = vmatprep.mubr.msk.f32.mxu1 %vm342_vm0, %v326_v53  ;;  %4770 = vmatmul.mubr.msk.f32.gmra.mrb[22].mxu0 %vm342_vm0, %v293_v54 }
  0x49   : > { %4772 = vmatprep.mubr.msk.f32.mxu0 %vm342_vm0, %v294_v55 }
  0x4b   : > { %4825 = vmatmul.mubr.msk.f32.gmra.mrb[24].mxu1 %vm342_vm0, %v327_v56 }
  0x4c   : > { %4827 = vmatprep.mubr.msk.f32.mxu1 %vm342_vm0, %v328_v57  ;;  %4773 = vmatmul.mubr.msk.f32.gmra.mrb[24].mxu0 %vm342_vm0, %v295_v58 }
  0x4d   : > { %4775 = vmatprep.mubr.msk.f32.mxu0 %vm342_vm0, %v296_v59 }
  0x4f   : > { %4828 = vmatmul.mubr.msk.f32.gmra.mrb[26].mxu1 %vm342_vm0, %v329_v60 }
  0x50   : > { %4830 = vmatprep.mubr.msk.f32.mxu1 %vm342_vm0, %v330_v61  ;;  %4776 = vmatmul.mubr.msk.f32.gmra.mrb[26].mxu0 %vm342_vm0, %v297_v62 }
  0x51   : > { %4778 = vmatprep.mubr.msk.f32.mxu0 %vm342_vm0, %v298_v63 }
  0x53   : > { %4831 = vmatmul.mubr.msk.f32.gmra.mrb[28].mxu1 %vm342_vm0, %v331_v0 }
  0x54   : > { %4833 = vmatprep.mubr.msk.f32.mxu1 %vm342_vm0, %v332_v1  ;;  %4779 = vmatmul.mubr.msk.f32.gmra.mrb[28].mxu0 %vm342_vm0, %v299_v2 }
  0x55   : > { %4781 = vmatprep.mubr.msk.f32.mxu0 %vm342_vm0, %v300_v3 }
  0x57   : > { %4834 = vmatmul.mubr.msk.f32.gmra.mrb[30].mxu1 %vm342_vm0, %v333_v4 }
  0x58   : > { %4782 = vmatmul.mubr.msk.f32.gmra.mrb[30].mxu0 %vm342_vm0, %v301_v5 }
  0xee   : > { %v4790_v6 = vpop.f32.mrb[0].mxu1 }
  0xef   : > { %v826_v7 = vpop.f32.mrb[1].mxu1  ;;  %v4738_v9 = vpop.f32.mrb[0].mxu0 }
  0xf0   : > { %v5068_v10 = vpack.c.bf16 %v4790_v6, %v826_v7  ;;  %v505_v11 = vpop.f32.mrb[1].mxu0 }
  0xf1   : > { %4840 = vmatprep.mubr.msk.f32.mxu0 %vm342_vm0, %v505_v11 }
  0xf2   : > { %v4793_v12 = vpop.f32.mrb[2].mxu1  ;;  %5070 = vmatprep.subr.msk.bf16.mxu0 %vm5797_vm1, %v5068_v10 }
  0xf3   : > { %v836_v13 = vpop.f32.mrb[3].mxu1  ;;  %5073 = vmatpush3.bf16.xpose.msk.msra.mxu0 %vm5797_vm1, %v5068_v10  ;;  %v4741_v14 = vpop.f32.mrb[2].mxu0 }
  0xf4   : > { %v5074_v15 = vpack.c.bf16 %v4793_v12, %v836_v13  ;;  %v515_v16 = vpop.f32.mrb[3].mxu0 }
  0xf5   : > { %4847 = vmatprep.mubr.msk.f32.mxu1 %vm342_vm0, %v515_v16 }
  0xf6   : > { %5076 = vmatprep.subr.msk.bf16.mxu1 %vm5797_vm1, %v5074_v15  ;;  %v4796_v17 = vpop.f32.mrb[4].mxu1 }
  0xf7   : > { %5079 = vmatpush3.bf16.xpose.msk.msra.mxu1 %vm5797_vm1, %v5074_v15  ;;  %v846_v18 = vpop.f32.mrb[5].mxu1  ;;  %v4744_v19 = vpop.f32.mrb[4].mxu0 }
  0xf8   : > { %v5080_v20 = vpack.c.bf16 %v4796_v17, %v846_v18  ;;  %v525_v21 = vpop.f32.mrb[5].mxu0 }
  0xfa   : > { %v4799_v22 = vpop.f32.mrb[6].mxu1  ;;  %5082 = vmatprep.subr.msk.bf16.mxu0 %vm5797_vm1, %v5080_v20  ;;  %4841 = vmatmul.mubr.msk.f32.vlgmr.msra.gmra.mrb[32].mxu0 %vm342_vm0, %v4738_v9 }
  0xfb   : > { %v856_v23 = vpop.f32.mrb[7].mxu1  ;;  %5085 = vmatpush3.bf16.xpose.msk.msra.mxu0 %vm5797_vm1, %v5080_v20  ;;  %v4747_v24 = vpop.f32.mrb[6].mxu0  ;;  %4854 = vmatprep.mubr.msk.f32.mxu0 %vm342_vm0, %v525_v21 }
  0xfc   : > { %v5086_v25 = vpack.c.bf16 %v4799_v22, %v856_v23  ;;  %v535_v26 = vpop.f32.mrb[7].mxu0 }
  0xfe   : > { %5088 = vmatprep.subr.msk.bf16.mxu1 %vm5797_vm1, %v5086_v25  ;;  %4848 = vmatmul.mubr.msk.f32.vlgmr.msra.gmra.mrb[32].mxu1 %vm342_vm0, %v4741_v14  ;;  %v4802_v27 = vpop.f32.mrb[8].mxu1 }
  0xff   : > { %5091 = vmatpush3.bf16.xpose.msk.msra.mxu1 %vm5797_vm1, %v5086_v25  ;;  %v866_v28 = vpop.f32.mrb[9].mxu1  ;;  %4861 = vmatprep.mubr.msk.f32.mxu1 %vm342_vm0, %v535_v26  ;;  %v4750_v29 = vpop.f32.mrb[8].mxu0  ;;  %v5914_v25 = vld [vmem:[%s6422_s5] sm:$0xff] }
 0x100   : > { %v5092_v30 = vpack.c.bf16 %v4802_v27, %v866_v28  ;;  %v545_v31 = vpop.f32.mrb[9].mxu0 }
 0x102   : > { %v4805_v32 = vpop.f32.mrb[10].mxu1  ;;  %5094 = vmatprep.subr.msk.bf16.mxu0 %vm5797_vm1, %v5092_v30  ;;  %4855 = vmatmul.mubr.msk.f32.vlgmr.msra.gmra.mrb[34].mxu0 %vm342_vm0, %v4744_v19 }
 0x103   : > { %v876_v33 = vpop.f32.mrb[11].mxu1  ;;  %5097 = vmatpush3.bf16.xpose.msk.msra.mxu0 %vm5797_vm1, %v5092_v30  ;;  %v4753_v34 = vpop.f32.mrb[10].mxu0  ;;  %4868 = vmatprep.mubr.msk.f32.mxu0 %vm342_vm0, %v545_v31 }
 0x104   : > { %v5098_v35 = vpack.c.bf16 %v4805_v32, %v876_v33  ;;  %v555_v36 = vpop.f32.mrb[11].mxu0 }
 0x106   : > { %5100 = vmatprep.subr.msk.bf16.mxu1 %vm5797_vm1, %v5098_v35  ;;  %4862 = vmatmul.mubr.msk.f32.vlgmr.msra.gmra.mrb[34].mxu1 %vm342_vm0, %v4747_v24  ;;  %v4808_v37 = vpop.f32.mrb[12].mxu1  ;;  %v5900_v24 = vld [vmem:[%s6421_s4] sm:$0xff] }
 0x107   : > { %5103 = vmatpush3.bf16.xpose.msk.msra.mxu1 %vm5797_vm1, %v5098_v35  ;;  %v886_v38 = vpop.f32.mrb[13].mxu1  ;;  %4875 = vmatprep.mubr.msk.f32.mxu1 %vm342_vm0, %v555_v36  ;;  %v4756_v39 = vpop.f32.mrb[12].mxu0 }
 0x108   : > { %v5104_v40 = vpack.c.bf16 %v4808_v37, %v886_v38  ;;  %v565_v41 = vpop.f32.mrb[13].mxu0 }
 0x10a   : > { %v4811_v42 = vpop.f32.mrb[14].mxu1  ;;  %5106 = vmatprep.subr.msk.bf16.mxu0 %vm5797_vm1, %v5104_v40  ;;  %4869 = vmatmul.mubr.msk.f32.vlgmr.msra.gmra.mrb[36].mxu0 %vm342_vm0, %v4750_v29 }
 0x10b   : > { %v896_v43 = vpop.f32.mrb[15].mxu1  ;;  %5109 = vmatpush3.bf16.xpose.msk.msra.mxu0 %vm5797_vm1, %v5104_v40  ;;  %v4759_v44 = vpop.f32.mrb[14].mxu0  ;;  %4882 = vmatprep.mubr.msk.f32.mxu0 %vm342_vm0, %v565_v41 }
 0x10c   : > { %v5110_v45 = vpack.c.bf16 %v4811_v42, %v896_v43  ;;  %v575_v46 = vpop.f32.mrb[15].mxu0 }
 0x10e   : > { %5112 = vmatprep.subr.msk.bf16.mxu1 %vm5797_vm1, %v5110_v45  ;;  %4876 = vmatmul.mubr.msk.f32.vlgmr.msra.gmra.mrb[36].mxu1 %vm342_vm0, %v4753_v34  ;;  %v4814_v47 = vpop.f32.mrb[16].mxu1 }
 0x10f   : > { %5115 = vmatpush3.bf16.xpose.msk.msra.mxu1 %vm5797_vm1, %v5110_v45  ;;  %v906_v48 = vpop.f32.mrb[17].mxu1  ;;  %4889 = vmatprep.mubr.msk.f32.mxu1 %vm342_vm0, %v575_v46  ;;  %v4762_v49 = vpop.f32.mrb[16].mxu0 }
 0x110   : > { %v5116_v50 = vpack.c.bf16 %v4814_v47, %v906_v48  ;;  %v585_v51 = vpop.f32.mrb[17].mxu0 }
 0x112   : > { %v4817_v52 = vpop.f32.mrb[18].mxu1  ;;  %5118 = vmatprep.subr.msk.bf16.mxu0 %vm5797_vm1, %v5116_v50  ;;  %4883 = vmatmul.mubr.msk.f32.vlgmr.msra.gmra.mrb[38].mxu0 %vm342_vm0, %v4756_v39 }
 0x113   : > { %v916_v53 = vpop.f32.mrb[19].mxu1  ;;  %5121 = vmatpush3.bf16.xpose.msk.msra.mxu0 %vm5797_vm1, %v5116_v50  ;;  %v4765_v54 = vpop.f32.mrb[18].mxu0  ;;  %4896 = vmatprep.mubr.msk.f32.mxu0 %vm342_vm0, %v585_v51 }
 0x114   : > { %v5122_v55 = vpack.c.bf16 %v4817_v52, %v916_v53  ;;  %v595_v56 = vpop.f32.mrb[19].mxu0 }
 0x116   : > { %5124 = vmatprep.subr.msk.bf16.mxu1 %vm5797_vm1, %v5122_v55  ;;  %4890 = vmatmul.mubr.msk.f32.vlgmr.msra.gmra.mrb[38].mxu1 %vm342_vm0, %v4759_v44  ;;  %v4820_v57 = vpop.f32.mrb[20].mxu1 }
 0x117   : > { %5127 = vmatpush3.bf16.xpose.msk.msra.mxu1 %vm5797_vm1, %v5122_v55  ;;  %v926_v58 = vpop.f32.mrb[21].mxu1  ;;  %4903 = vmatprep.mubr.msk.f32.mxu1 %vm342_vm0, %v595_v56  ;;  %v4768_v59 = vpop.f32.mrb[20].mxu0 }
 0x118   : > { %v5128_v60 = vpack.c.bf16 %v4820_v57, %v926_v58  ;;  %v605_v61 = vpop.f32.mrb[21].mxu0 }
 0x11a   : > { %v4823_v62 = vpop.f32.mrb[22].mxu1  ;;  %5130 = vmatprep.subr.msk.bf16.mxu0 %vm5797_vm1, %v5128_v60  ;;  %4897 = vmatmul.mubr.msk.f32.vlgmr.msra.gmra.mrb[40].mxu0 %vm342_vm0, %v4762_v49 }
 0x11b   : > { %v936_v63 = vpop.f32.mrb[23].mxu1  ;;  %5133 = vmatpush3.bf16.xpose.msk.msra.mxu0 %vm5797_vm1, %v5128_v60  ;;  %v4771_v0 = vpop.f32.mrb[22].mxu0  ;;  %4910 = vmatprep.mubr.msk.f32.mxu0 %vm342_vm0, %v605_v61 }
 0x11c   : > { %v5134_v1 = vpack.c.bf16 %v4823_v62, %v936_v63  ;;  %v615_v2 = vpop.f32.mrb[23].mxu0 }
 0x11e   : > { %5136 = vmatprep.subr.msk.bf16.mxu1 %vm5797_vm1, %v5134_v1  ;;  %4904 = vmatmul.mubr.msk.f32.vlgmr.msra.gmra.mrb[40].mxu1 %vm342_vm0, %v4765_v54  ;;  %v4826_v3 = vpop.f32.mrb[24].mxu1 }
 0x11f   : > { %5139 = vmatpush3.bf16.xpose.msk.msra.mxu1 %vm5797_vm1, %v5134_v1  ;;  %v946_v4 = vpop.f32.mrb[25].mxu1  ;;  %4917 = vmatprep.mubr.msk.f32.mxu1 %vm342_vm0, %v615_v2  ;;  %v4774_v5 = vpop.f32.mrb[24].mxu0 }
 0x120   : > { %v5140_v6 = vpack.c.bf16 %v4826_v3, %v946_v4  ;;  %v625_v7 = vpop.f32.mrb[25].mxu0 }
 0x122   : > { %v4829_v9 = vpop.f32.mrb[26].mxu1  ;;  %5142 = vmatprep.subr.msk.bf16.mxu0 %vm5797_vm1, %v5140_v6  ;;  %4911 = vmatmul.mubr.msk.f32.vlgmr.msra.gmra.mrb[42].mxu0 %vm342_vm0, %v4768_v59 }
 0x123   : > { %v956_v10 = vpop.f32.mrb[27].mxu1  ;;  %5145 = vmatpush3.bf16.xpose.msk.msra.mxu0 %vm5797_vm1, %v5140_v6  ;;  %v4777_v11 = vpop.f32.mrb[26].mxu0  ;;  %4924 = vmatprep.mubr.msk.f32.mxu0 %vm342_vm0, %v625_v7 }
 0x124   : > { %v5146_v12 = vpack.c.bf16 %v4829_v9, %v956_v10  ;;  %v635_v13 = vpop.f32.mrb[27].mxu0 }
 0x126   : > { %5148 = vmatprep.subr.msk.bf16.mxu1 %vm5797_vm1, %v5146_v12  ;;  %4918 = vmatmul.mubr.msk.f32.vlgmr.msra.gmra.mrb[42].mxu1 %vm342_vm0, %v4771_v0  ;;  %v4832_v14 = vpop.f32.mrb[28].mxu1 }
 0x127   : > { %5151 = vmatpush3.bf16.xpose.msk.msra.mxu1 %vm5797_vm1, %v5146_v12  ;;  %v966_v15 = vpop.f32.mrb[29].mxu1  ;;  %4931 = vmatprep.mubr.msk.f32.mxu1 %vm342_vm0, %v635_v13  ;;  %v4780_v16 = vpop.f32.mrb[28].mxu0 }
 0x128   : > { %v5152_v17 = vpack.c.bf16 %v4832_v14, %v966_v15  ;;  %v645_v18 = vpop.f32.mrb[29].mxu0 }
 0x12a   : > { %v4835_v19 = vpop.f32.mrb[30].mxu1  ;;  %5154 = vmatprep.subr.msk.bf16.mxu0 %vm5797_vm1, %v5152_v17  ;;  %4925 = vmatmul.mubr.msk.f32.vlgmr.msra.gmra.mrb[44].mxu0 %vm342_vm0, %v4774_v5 }
 0x12b   : > { %v976_v20 = vpop.f32.mrb[31].mxu1  ;;  %5157 = vmatpush3.bf16.xpose.msk.msra.mxu0 %vm5797_vm1, %v5152_v17  ;;  %v4783_v21 = vpop.f32.mrb[30].mxu0  ;;  %4938 = vmatprep.mubr.msk.f32.mxu0 %vm342_vm0, %v645_v18 }
 0x12c   : > { %v5158_v22 = vpack.c.bf16 %v4835_v19, %v976_v20  ;;  %v655_v23 = vpop.f32.mrb[31].mxu0 }
 0x12e   : > { %5160 = vmatprep.subr.msk.bf16.mxu1 %vm5797_vm1, %v5158_v22  ;;  %4932 = vmatmul.mubr.msk.f32.vlgmr.msra.gmra.mrb[44].mxu1 %vm342_vm0, %v4777_v11 }
 0x12f   : > { %5163 = vmatpush3.bf16.xpose.msk.msra.mxu1 %vm5797_vm1, %v5158_v22  ;;  %4945 = vmatprep.mubr.msk.f32.mxu1 %vm342_vm0, %v655_v23 }
 0x132   : > { %4939 = vmatmul.mubr.msk.f32.vlgmr.msra.gmra.mrb[46].mxu0 %vm342_vm0, %v4780_v16 }
 0x133   : > { %4952 = vmatprep.mubr.msk.f32.mxu0 %vm342_vm0, %v5900_v24 }
 0x136   : > { %4946 = vmatmul.mubr.msk.f32.vlgmr.msra.gmra.mrb[46].mxu1 %vm342_vm0, %v4783_v21 }
 0x137   : > { %4959 = vmatprep.mubr.msk.f32.mxu1 %vm342_vm0, %v5900_v24 }
 0x1cd   : > { %v4842_v26 = vpop.f32.mrb[32].mxu0 }
 0x1ce   : > { %v1069_v27 = vadd.f32 %v4842_v26, %v5909_v8  ;;  %v1063_v28 = vpop.f32.mrb[33].mxu0 }
 0x1cf   : > { %v1064_v29 = vadd.f32 %v1063_v28, %v5914_v25 }
 0x1d0   : > { %v4465_v30 = vmul.f32 -1.442695, %v1069_v27 }
 0x1d1   : > { %v4849_v31 = vpop.f32.mrb[32].mxu1  ;;  %v4464_v32 = vmul.f32 -1.442695, %v1064_v29 }
 0x1d2   : > { %5269 = vpow2.f32 %v4465_v30  ;;  %v1156_v33 = vadd.f32 %v4849_v31, %v5909_v8  ;;  %v1150_v34 = vpop.f32.mrb[33].mxu1 }
 0x1d3   : > { %5271 = vpow2.f32 %v4464_v32  ;;  %v1151_v35 = vadd.f32 %v1150_v34, %v5914_v25 }
 0x1d4   : > { %v4467_v36 = vmul.f32 -1.442695, %v1156_v33 }
 0x1d5   : > { %v4466_v37 = vmul.f32 -1.442695, %v1151_v35  ;;  %v4856_v38 = vpop.f32.mrb[34].mxu0 }
 0x1d6   : > { %5273 = vpow2.f32 %v4467_v36  ;;  %v1243_v39 = vadd.f32 %v4856_v38, %v5909_v8  ;;  %v1237_v40 = vpop.f32.mrb[35].mxu0 }
 0x1d7   : > { %5275 = vpow2.f32 %v4466_v37  ;;  %v1238_v41 = vadd.f32 %v1237_v40, %v5914_v25 }
 0x1d8   : > { %v4469_v42 = vmul.f32 -1.442695, %v1243_v39  ;;  %v5936_v39 = vld [vmem:[%s6421_s4 + $0x8] sm:$0xff] }
 0x1d9   : > { %v4863_v43 = vpop.f32.mrb[34].mxu1  ;;  %v4468_v44 = vmul.f32 -1.442695, %v1238_v41 }
 0x1da   : > { %5277 = vpow2.f32 %v4469_v42  ;;  %v1330_v45 = vadd.f32 %v4863_v43, %v5909_v8  ;;  %v1324_v46 = vpop.f32.mrb[35].mxu1 }
 0x1db   : > { %5279 = vpow2.f32 %v4468_v44  ;;  %v1325_v47 = vadd.f32 %v1324_v46, %v5914_v25 }
 0x1dc   : > { %v5270_v48 = vpop.eup %5269  ;;  %v4471_v49 = vmul.f32 -1.442695, %v1330_v45 }
 0x1dd   : > { %v5272_v50 = vpop.eup %5271  ;;  %v2474_v51 = vadd.f32 1.0, %v5270_v48  ;;  %v4470_v52 = vmul.f32 -1.442695, %v1325_v47  ;;  %v4870_v53 = vpop.f32.mrb[36].mxu0 }
 0x1de   : > { %v2473_v54 = vadd.f32 1.0, %v5272_v50  ;;  %5281 = vpow2.f32 %v4471_v49  ;;  %v1417_v55 = vadd.f32 %v4870_v53, %v5909_v8  ;;  %v1411_v56 = vpop.f32.mrb[37].mxu0 }
 0x1df   : > { %5283 = vrcp.f32 %v2474_v51  ;;  %v1412_v57 = vadd.f32 %v1411_v56, %v5914_v25 }
 0x1e0   : > { %v5274_v58 = vpop.eup %5273  ;;  %5285 = vrcp.f32 %v2473_v54  ;;  %v4473_v59 = vmul.f32 -1.442695, %v1417_v55 }
 0x1e1   : > { %v5276_v60 = vpop.eup %5275  ;;  %v2476_v61 = vadd.f32 1.0, %v5274_v58  ;;  %5287 = vpow2.f32 %v4470_v52  ;;  %v4877_v62 = vpop.f32.mrb[36].mxu1  ;;  %v4472_v63 = vmul.f32 -1.442695, %v1412_v57 }
 0x1e2   : > { %v2475_v0 = vadd.f32 1.0, %v5276_v60  ;;  %5289 = vpow2.f32 %v4473_v59  ;;  %v1504_v1 = vadd.f32 %v4877_v62, %v5909_v8  ;;  %v1498_v2 = vpop.f32.mrb[37].mxu1 }
 0x1e3   : > { %5291 = vrcp.f32 %v2476_v61  ;;  %v1499_v3 = vadd.f32 %v1498_v2, %v5914_v25 }
 0x1e4   : > { %v5278_v4 = vpop.eup %5277  ;;  %5293 = vrcp.f32 %v2475_v0  ;;  %v4475_v5 = vmul.f32 -1.442695, %v1504_v1 }
 0x1e5   : > { %v5280_v6 = vpop.eup %5279  ;;  %v2478_v7 = vadd.f32 1.0, %v5278_v4  ;;  %5295 = vpow2.f32 %v4472_v63  ;;  %v4474_v9 = vmul.f32 -1.442695, %v1499_v3  ;;  %v4884_v10 = vpop.f32.mrb[38].mxu0 }
 0x1e6   : > { %v2477_v11 = vadd.f32 1.0, %v5280_v6  ;;  %5297 = vpow2.f32 %v4475_v5  ;;  %v1591_v12 = vadd.f32 %v4884_v10, %v5909_v8  ;;  %v1585_v13 = vpop.f32.mrb[39].mxu0 }
 0x1e7   : > { %5299 = vrcp.f32 %v2478_v7  ;;  %v1586_v14 = vadd.f32 %v1585_v13, %v5914_v25 }
 0x1e8   : > { %v5282_v15 = vpop.eup %5281  ;;  %5301 = vrcp.f32 %v2477_v11  ;;  %v4477_v16 = vmul.f32 -1.442695, %v1591_v12 }
 0x1e9   : > { %v5284_v17 = vpop.eup %5283  ;;  %v2480_v18 = vadd.f32 1.0, %v5282_v15  ;;  %5303 = vpow2.f32 %v4474_v9  ;;  %v4891_v19 = vpop.f32.mrb[38].mxu1  ;;  %v4476_v20 = vmul.f32 -1.442695, %v1586_v14 }
 0x1ea   : > { %v5286_v21 = vpop.eup %5285  ;;  %5305 = vpow2.f32 %v4477_v16  ;;  %v1678_v22 = vadd.f32 %v4891_v19, %v5909_v8  ;;  %v1672_v23 = vpop.f32.mrb[39].mxu1 }
 0x1eb   : > { %v5288_v26 = vpop.eup %5287  ;;  %5307 = vrcp.f32 %v2480_v18  ;;  %v1673_v27 = vadd.f32 %v1672_v23, %v5914_v25  ;;  %v5164_v28 = vpack.c.bf16 %v5284_v17, %v5286_v21 }
 0x1ec   : > { %v5290_v29 = vpop.eup %5289  ;;  %v2479_v30 = vadd.f32 1.0, %v5288_v26  ;;  %v4479_v31 = vmul.f32 -1.442695, %v1678_v22  ;;  %5309 = vpow2.f32 %v4476_v20 }
 0x1ed   : > { %v5292_v32 = vpop.eup %5291  ;;  %v2482_v33 = vadd.f32 1.0, %v5290_v29  ;;  %v4478_v34 = vmul.f32 -1.442695, %v1673_v27  ;;  %v4898_v35 = vpop.f32.mrb[40].mxu0  ;;  %5165 = vmatprep.subr.bf16.mxu0 %v5164_v28 }
 0x1ee   : > { %v5294_v36 = vpop.eup %5293  ;;  %5311 = vrcp.f32 %v2479_v30  ;;  %v1765_v37 = vadd.f32 %v4898_v35, %v5909_v8  ;;  %v1759_v38 = vpop.f32.mrb[41].mxu0  ;;  %5167 = vmatpush3.bf16.msra.mxu0 %v5164_v28 }
 0x1ef   : > { %v5296_v40 = vpop.eup %5295  ;;  %5313 = vrcp.f32 %v2482_v33  ;;  %v1760_v41 = vadd.f32 %v1759_v38, %v5914_v25  ;;  %v5168_v42 = vpack.c.bf16 %v5292_v32, %v5294_v36 }
 0x1f0   : > { %v5298_v43 = vpop.eup %5297  ;;  %v2481_v44 = vadd.f32 1.0, %v5296_v40  ;;  %5315 = vpow2.f32 %v4479_v31  ;;  %v4481_v45 = vmul.f32 -1.442695, %v1765_v37 }
 0x1f1   : > { %v5300_v46 = vpop.eup %5299  ;;  %v2484_v47 = vadd.f32 1.0, %v5298_v43  ;;  %5317 = vpow2.f32 %v4478_v34  ;;  %v4905_v48 = vpop.f32.mrb[40].mxu1  ;;  %v4480_v49 = vmul.f32 -1.442695, %v1760_v41  ;;  %5169 = vmatprep.subr.bf16.mxu1 %v5168_v42  ;;  %4953 = vmatmul.mubr.msk.f32.vlgmr.msra.gmra.mrb[48].mxu0 %vm342_vm0, %v5936_v39 }
 0x1f2   : > { %v5302_v50 = vpop.eup %5301  ;;  %5319 = vrcp.f32 %v2481_v44  ;;  %v1852_v51 = vadd.f32 %v4905_v48, %v5909_v8  ;;  %v1846_v52 = vpop.f32.mrb[41].mxu1  ;;  %5171 = vmatpush3.bf16.msra.mxu1 %v5168_v42  ;;  %4966 = vmatprep.mubr.msk.f32.mxu0 %vm342_vm0, %v5900_v24 }
 0x1f3   : > { %v5304_v53 = vpop.eup %5303  ;;  %5321 = vrcp.f32 %v2484_v47  ;;  %v1847_v54 = vadd.f32 %v1846_v52, %v5914_v25  ;;  %v5172_v55 = vpack.c.bf16 %v5300_v46, %v5302_v50 }
 0x1f4   : > { %v5306_v56 = vpop.eup %5305  ;;  %v2483_v57 = vadd.f32 1.0, %v5304_v53  ;;  %5323 = vpow2.f32 %v4481_v45  ;;  %v4483_v58 = vmul.f32 -1.442695, %v1852_v51 }
 0x1f5   : > { %v5308_v59 = vpop.eup %5307  ;;  %v2486_v60 = vadd.f32 1.0, %v5306_v56  ;;  %5325 = vpow2.f32 %v4480_v49  ;;  %v4912_v61 = vpop.f32.mrb[42].mxu0  ;;  %4960 = vmatmul.mubr.msk.f32.vlgmr.msra.gmra.mrb[48].mxu1 %vm342_vm0, %v5936_v39  ;;  %5173 = vmatprep.subr.bf16.mxu0 %v5172_v55  ;;  %v4482_v63 = vmul.f32 -1.442695, %v1847_v54 }
 0x1f6   : > { %v5310_v62 = vpop.eup %5309  ;;  %5327 = vrcp.f32 %v2483_v57  ;;  %v1939_v0 = vadd.f32 %v4912_v61, %v5909_v8  ;;  %v1933_v1 = vpop.f32.mrb[43].mxu0  ;;  %5175 = vmatpush3.bf16.msra.mxu0 %v5172_v55  ;;  %4973 = vmatprep.mubr.msk.f32.mxu1 %vm342_vm0, %v5900_v24 }
 0x1f7   : > { %5329 = vrcp.f32 %v2486_v60  ;;  %v2485_v2 = vadd.f32 1.0, %v5310_v62  ;;  %v1934_v3 = vadd.f32 %v1933_v1, %v5914_v25 }
 0x1f8   : > { %v5312_v4 = vpop.eup %5311  ;;  %5331 = vpow2.f32 %v4483_v58  ;;  %v4485_v5 = vmul.f32 -1.442695, %v1939_v0 }
 0x1f9   : > { %v5314_v6 = vpop.eup %5313  ;;  %5333 = vrcp.f32 %v2485_v2  ;;  %v4919_v7 = vpop.f32.mrb[42].mxu1  ;;  %v4484_v9 = vmul.f32 -1.442695, %v1934_v3  ;;  %v5176_v10 = vpack.c.bf16 %v5308_v59, %v5312_v4  ;;  %4967 = vmatmul.mubr.msk.f32.vlgmr.msra.gmra.mrb[50].mxu0 %vm342_vm0, %v5936_v39 }
 0x1fa   : > { %v5316_v11 = vpop.eup %5315  ;;  %5335 = vpow2.f32 %v4482_v63  ;;  %v2026_v12 = vadd.f32 %v4919_v7, %v5909_v8  ;;  %v2020_v13 = vpop.f32.mrb[43].mxu1  ;;  %4980 = vmatprep.mubr.msk.f32.mxu0 %vm342_vm0, %v5900_v24 }
 0x1fb   : > { %v5318_v14 = vpop.eup %5317  ;;  %v2488_v15 = vadd.f32 1.0, %v5316_v11  ;;  %5337 = vpow2.f32 %v4485_v5  ;;  %v2021_v16 = vadd.f32 %v2020_v13, %v5914_v25  ;;  %5177 = vmatprep.subr.bf16.mxu1 %v5176_v10 }
 0x1fc   : > { %v5320_v17 = vpop.eup %5319  ;;  %v2487_v18 = vadd.f32 1.0, %v5318_v14  ;;  %v4487_v19 = vmul.f32 -1.442695, %v2026_v12  ;;  %5339 = vpow2.f32 %v4484_v9  ;;  %5179 = vmatpush3.bf16.msra.mxu1 %v5176_v10 }
 0x1fd   : > { %v5322_v20 = vpop.eup %5321  ;;  %5341 = vrcp.f32 %v2488_v15  ;;  %v4486_v21 = vmul.f32 -1.442695, %v2021_v16  ;;  %v4926_v22 = vpop.f32.mrb[44].mxu0  ;;  %v5180_v23 = vpack.c.bf16 %v5314_v6, %v5320_v17 }
 0x1fe   : > { %v5324_v26 = vpop.eup %5323  ;;  %5343 = vrcp.f32 %v2487_v18  ;;  %v2113_v27 = vadd.f32 %v4926_v22, %v5909_v8  ;;  %v2107_v28 = vpop.f32.mrb[45].mxu0 }
 0x1ff   : > { %v5326_v29 = vpop.eup %5325  ;;  %v2490_v30 = vadd.f32 1.0, %v5324_v26  ;;  %5345 = vpow2.f32 %v4487_v19  ;;  %v2108_v31 = vadd.f32 %v2107_v28, %v5914_v25  ;;  %4974 = vmatmul.mubr.msk.f32.vlgmr.msra.gmra.mrb[50].mxu1 %vm342_vm0, %v5936_v39  ;;  %5181 = vmatprep.subr.bf16.mxu0 %v5180_v23 }
 0x200   : > { %v5328_v32 = vpop.eup %5327  ;;  %v2489_v33 = vadd.f32 1.0, %v5326_v29  ;;  %5347 = vpow2.f32 %v4486_v21  ;;  %v4489_v34 = vmul.f32 -1.442695, %v2113_v27  ;;  %5183 = vmatpush3.bf16.msra.mxu0 %v5180_v23  ;;  %4987 = vmatprep.mubr.msk.f32.mxu1 %vm342_vm0, %v5900_v24 }
 0x201   : > { %v5330_v35 = vpop.eup %5329  ;;  %5349 = vrcp.f32 %v2490_v30  ;;  %v4933_v36 = vpop.f32.mrb[44].mxu1  ;;  %v4488_v37 = vmul.f32 -1.442695, %v2108_v31  ;;  %v5184_v38 = vpack.c.bf16 %v5322_v20, %v5328_v32 }
 0x202   : > { %v5332_v40 = vpop.eup %5331  ;;  %5351 = vrcp.f32 %v2489_v33  ;;  %v2200_v41 = vadd.f32 %v4933_v36, %v5909_v8  ;;  %v2194_v42 = vpop.f32.mrb[45].mxu1 }
 0x203   : > { %v5334_v43 = vpop.eup %5333  ;;  %v2492_v44 = vadd.f32 1.0, %v5332_v40  ;;  %5353 = vpow2.f32 %v4489_v34  ;;  %v2195_v45 = vadd.f32 %v2194_v42, %v5914_v25  ;;  %5185 = vmatprep.subr.bf16.mxu1 %v5184_v38  ;;  %4981 = vmatmul.mubr.msk.f32.vlgmr.msra.gmra.mrb[52].mxu0 %vm342_vm0, %v5936_v39 }
 0x204   : > { %v5336_v46 = vpop.eup %5335  ;;  %v4491_v47 = vmul.f32 -1.442695, %v2200_v41  ;;  %5355 = vpow2.f32 %v4488_v37  ;;  %5187 = vmatpush3.bf16.msra.mxu1 %v5184_v38  ;;  %v5188_v48 = vpack.c.bf16 %v5330_v35, %v5334_v43  ;;  %4994 = vmatprep.mubr.msk.f32.mxu0 %vm342_vm0, %v5900_v24 }
 0x205   : > { %v5338_v49 = vpop.eup %5337  ;;  %5357 = vrcp.f32 %v2492_v44  ;;  %v2491_v50 = vadd.f32 1.0, %v5336_v46  ;;  %v4940_v51 = vpop.f32.mrb[46].mxu0  ;;  %v4490_v54 = vmul.f32 -1.442695, %v2195_v45 }
 0x206   : > { %v5340_v52 = vpop.eup %5339  ;;  %v2494_v53 = vadd.f32 1.0, %v5338_v49  ;;  %5359 = vpow2.f32 %v4491_v47  ;;  %v2287_v55 = vadd.f32 %v4940_v51, %v5909_v8  ;;  %v2281_v56 = vpop.f32.mrb[47].mxu0  ;;  %5189 = vmatprep.subr.bf16.mxu0 %v5188_v48 }
 0x207   : > { %v5342_v57 = vpop.eup %5341  ;;  %5361 = vrcp.f32 %v2491_v50  ;;  %v2493_v58 = vadd.f32 1.0, %v5340_v52  ;;  %v2282_v59 = vadd.f32 %v2281_v56, %v5914_v25  ;;  %4988 = vmatmul.mubr.msk.f32.vlgmr.msra.gmra.mrb[52].mxu1 %vm342_vm0, %v5936_v39  ;;  %5191 = vmatpush3.bf16.msra.mxu0 %v5188_v48 }
 0x208   : > { %v5344_v60 = vpop.eup %5343  ;;  %5363 = vrcp.f32 %v2494_v53  ;;  %v4493_v61 = vmul.f32 -1.442695, %v2287_v55  ;;  %5001 = vmatprep.mubr.msk.f32.mxu1 %vm342_vm0, %v5900_v24 }
 0x209   : > { %v5346_v62 = vpop.eup %5345  ;;  %5365 = vrcp.f32 %v2493_v58  ;;  %v4947_v63 = vpop.f32.mrb[46].mxu1  ;;  %v5192_v0 = vpack.c.bf16 %v5342_v57, %v5344_v60  ;;  %v4492_v7 = vmul.f32 -1.442695, %v2282_v59 }
 0x20a   : > { %v5348_v1 = vpop.eup %5347  ;;  %v2496_v2 = vadd.f32 1.0, %v5346_v62  ;;  %5367 = vpow2.f32 %v4490_v54  ;;  %v2374_v3 = vadd.f32 %v4947_v63, %v5909_v8  ;;  %v2368_v4 = vpop.f32.mrb[47].mxu1  ;;  %4995 = vmatmul.mubr.msk.f32.vlgmr.msra.gmra.mrb[54].mxu0 %vm342_vm0, %v5936_v39 }
 0x20b   : > { %v5350_v5 = vpop.eup %5349  ;;  %v2495_v6 = vadd.f32 1.0, %v5348_v1  ;;  %5369 = vpow2.f32 %v4493_v61  ;;  %v2369_v9 = vadd.f32 %v2368_v4, %v5914_v25  ;;  %5193 = vmatprep.subr.bf16.mxu1 %v5192_v0  ;;  %5008 = vmatprep.mubr.msk.f32.mxu0 %vm342_vm0, %v5900_v24 }
 0x20c   : > { %v5352_v10 = vpop.eup %5351  ;;  %5371 = vrcp.f32 %v2496_v2  ;;  %v4495_v11 = vmul.f32 -1.442695, %v2374_v3  ;;  %5195 = vmatpush3.bf16.msra.mxu1 %v5192_v0 }
 0x20d   : > { %v5354_v12 = vpop.eup %5353  ;;  %5373 = vrcp.f32 %v2495_v6  ;;  %v5196_v8 = vpack.c.bf16 %v5350_v5, %v5352_v10  ;;  %v4494_v15 = vmul.f32 -1.442695, %v2369_v9 }
 0x20e   : > { %v5356_v13 = vpop.eup %5355  ;;  %v2498_v14 = vadd.f32 1.0, %v5354_v12  ;;  %5375 = vpow2.f32 %v4495_v11 }
 0x20f   : > { %v5358_v16 = vpop.eup %5357  ;;  %v2497_v17 = vadd.f32 1.0, %v5356_v13  ;;  %5377 = vpow2.f32 %v4492_v7  ;;  %5002 = vmatmul.mubr.msk.f32.vlgmr.msra.gmra.mrb[54].mxu1 %vm342_vm0, %v5936_v39  ;;  %5197 = vmatprep.subr.bf16.mxu0 %v5196_v8 }
 0x210   : > { %v5360_v25 = vpop.eup %5359  ;;  %5379 = vrcp.f32 %v2498_v14  ;;  %5199 = vmatpush3.bf16.msra.mxu0 %v5196_v8  ;;  %5015 = vmatprep.mubr.msk.f32.mxu1 %vm342_vm0, %v5900_v24 }
 0x211   : > { %v5362_v18 = vpop.eup %5361  ;;  %v2500_v19 = vadd.f32 1.0, %v5360_v25  ;;  %5381 = vrcp.f32 %v2497_v17 }
 0x212   : > { %v5364_v20 = vpop.eup %5363  ;;  %5383 = vpow2.f32 %v4494_v15  ;;  %v5200_v21 = vpack.c.bf16 %v5358_v16, %v5362_v18 }
 0x213   : > { %v5366_v22 = vpop.eup %5365  ;;  %5009 = vmatmul.mubr.msk.f32.vlgmr.msra.gmra.mrb[56].mxu0 %vm342_vm0, %v5936_v39  ;;  %5385 = vrcp.f32 %v2500_v19 }
 0x214   : > { %v5368_v23 = vpop.eup %5367  ;;  %5201 = vmatprep.subr.bf16.mxu1 %v5200_v21  ;;  %v5204_v26 = vpack.c.bf16 %v5364_v20, %v5366_v22  ;;  %5022 = vmatprep.mubr.msk.f32.mxu0 %vm342_vm0, %v5900_v24 }
 0x215   : > { %v5370_v27 = vpop.eup %5369  ;;  %v2499_v28 = vadd.f32 1.0, %v5368_v23  ;;  %5203 = vmatpush3.bf16.msra.mxu1 %v5200_v21 }
 0x216   : > { %v5372_v29 = vpop.eup %5371  ;;  %v2502_v30 = vadd.f32 1.0, %v5370_v27  ;;  %5205 = vmatprep.subr.bf16.mxu0 %v5204_v26 }
 0x217   : > { %v5374_v31 = vpop.eup %5373  ;;  %5387 = vrcp.f32 %v2499_v28  ;;  %5207 = vmatpush3.bf16.msra.mxu0 %v5204_v26 }
 0x218   : > { %v5376_v32 = vpop.eup %5375  ;;  %5016 = vmatmul.mubr.msk.f32.vlgmr.msra.gmra.mrb[56].mxu1 %vm342_vm0, %v5936_v39  ;;  %v5208_v33 = vpack.c.bf16 %v5372_v29, %v5374_v31  ;;  %5389 = vrcp.f32 %v2502_v30 }
 0x219   : > { %v5378_v34 = vpop.eup %5377  ;;  %v2504_v35 = vadd.f32 1.0, %v5376_v32  ;;  %5029 = vmatprep.mubr.msk.f32.mxu1 %vm342_vm0, %v5900_v24 }
 0x21a   : > { %v5380_v36 = vpop.eup %5379  ;;  %v2501_v37 = vadd.f32 1.0, %v5378_v34  ;;  %5209 = vmatprep.subr.bf16.mxu1 %v5208_v33  ;;  %5023 = vmatmul.mubr.msk.f32.vlgmr.msra.gmra.mrb[58].mxu0 %vm342_vm0, %v5936_v39 }
 0x21b   : > { %v5382_v38 = vpop.eup %5381  ;;  %5211 = vmatpush3.bf16.msra.mxu1 %v5208_v33  ;;  %5036 = vmatprep.mubr.msk.f32.mxu0 %vm342_vm0, %v5900_v24 }
 0x21c   : > { %v5384_v40 = vpop.eup %5383  ;;  %5391 = vrcp.f32 %v2501_v37  ;;  %v5212_v41 = vpack.c.bf16 %v5380_v36, %v5382_v38 }
 0x21d   : > { %5393 = vrcp.f32 %v2504_v35  ;;  %v2503_v42 = vadd.f32 1.0, %v5384_v40  ;;  %v5386_v43 = vpop.eup %5385 }
 0x21e   : > { %5030 = vmatmul.mubr.msk.f32.vlgmr.msra.gmra.mrb[58].mxu1 %vm342_vm0, %v5936_v39  ;;  %5213 = vmatprep.subr.bf16.mxu0 %v5212_v41 }
 0x21f   : > { %5395 = vrcp.f32 %v2503_v42  ;;  %5215 = vmatpush3.bf16.msra.mxu0 %v5212_v41  ;;  %5043 = vmatprep.mubr.msk.f32.mxu1 %vm342_vm0, %v5900_v24 }
 0x221   : > { %v5388_v44 = vpop.eup %5387 }
 0x222   : > { %v5216_v45 = vpack.c.bf16 %v5386_v43, %v5388_v44  ;;  %5037 = vmatmul.mubr.msk.f32.vlgmr.msra.gmra.mrb[60].mxu0 %vm342_vm0, %v5936_v39  ;;  %v5390_v46 = vpop.eup %5389 }
 0x223   : > { %5050 = vmatprep.mubr.msk.f32.mxu0 %vm342_vm0, %v5900_v24 }
 0x224   : > { %5217 = vmatprep.subr.bf16.mxu1 %v5216_v45 }
 0x225   : > { %5219 = vmatpush3.bf16.msra.mxu1 %v5216_v45 }
 0x226   : > { %v5392_v47 = vpop.eup %5391 }
 0x227   : > { %v5394_v48 = vpop.eup %5393  ;;  %v5220_v49 = vpack.c.bf16 %v5390_v46, %v5392_v47 }
 0x228   : > { %5044 = vmatmul.mubr.msk.f32.vlgmr.msra.gmra.mrb[60].mxu1 %vm342_vm0, %v5936_v39 }
 0x229   : > { %v5396_v50 = vpop.eup %5395  ;;  %5221 = vmatprep.subr.bf16.mxu0 %v5220_v49  ;;  %5057 = vmatprep.mubr.msk.f32.mxu1 %vm342_vm0, %v5900_v24 }
 0x22a   : > { %v5224_v51 = vpack.c.bf16 %v5394_v48, %v5396_v50  ;;  %5223 = vmatpush3.bf16.msra.mxu0 %v5220_v49 }
 0x22c   : > { %5225 = vmatprep.subr.bf16.mxu1 %v5224_v51 }
 0x22d   : > { %5227 = vmatpush3.bf16.msra.mxu1 %v5224_v51  ;;  %5051 = vmatmul.mubr.msk.f32.vlgmr.msra.gmra.mrb[62].mxu0 %vm342_vm0, %v5936_v39 }
 0x230   : > { %5058 = vmatmul.mubr.msk.f32.vlgmr.msra.gmra.mrb[62].mxu1 %vm342_vm0, %v5936_v39 }
 0x2c4   : > { %v4954_v52 = vpop.f32.mrb[48].mxu0 }
 0x2c5   : > { %v3776_v53 = vsel %vm342_vm0, %v4954_v52, -inf  ;;  %v2641_v54 = vpop.f32.mrb[49].mxu0 }
 0x2c6   : > { %v3775_v55 = vsel %vm342_vm0, %v2641_v54, -inf }
 0x2c7   : > { %v3777_v56 = vmax.f32 %v3775_v55, %v3776_v53 }
 0x2c8   : > { %v4961_v57 = vpop.f32.mrb[48].mxu1 }
 0x2c9   : > { %v3785_v24 = vsel %vm342_vm0, %v4961_v57, -inf  ;;  %v3778_v58 = vrot.slane %v3777_v56, 4  ;;  %v2716_v59 = vpop.f32.mrb[49].mxu1 }
 0x2ca   : > { %v3784_v60 = vsel %vm342_vm0, %v2716_v59, -inf }
 0x2cb   : > { %v3779_v61 = vmax.f32 %v3777_v56, %v3778_v58  ;;  %v3786_v62 = vmax.f32 %v3784_v60, %v3785_v24 }
 0x2cc   : > { %v4968_v63 = vpop.f32.mrb[50].mxu0 }
 0x2cd   : > { %v3780_v0 = vrot.slane %v3779_v61, 2  ;;  %v3787_v1 = vrot.slane %v3786_v62, 4  ;;  %v3794_v39 = vsel %vm342_vm0, %v4968_v63, -inf  ;;  %v2791_v2 = vpop.f32.mrb[51].mxu0 }
 0x2ce   : > { %v3793_v3 = vsel %vm342_vm0, %v2791_v2, -inf }
 0x2cf   : > { %v3781_v4 = vmax.f32 %v3779_v61, %v3780_v0  ;;  %v3788_v5 = vmax.f32 %v3786_v62, %v3787_v1  ;;  %v3795_v6 = vmax.f32 %v3793_v3, %v3794_v39 }
 0x2d1   : > { %v3782_v7 = vrot.slane %v3781_v4, 1  ;;  %v3789_v9 = vrot.slane %v3788_v5, 2  ;;  %v3796_v10 = vrot.slane %v3795_v6, 4 }
 0x2d2   : > { %v6019_v11 = vpop.f32.mrb[50].mxu1 }
 0x2d3   : > { %v3783_v12 = vmax.f32 %v3781_v4, %v3782_v7  ;;  %v3790_v8 = vmax.f32 %v3788_v5, %v3789_v9  ;;  %v3803_v13 = vsel %vm342_vm0, %v6019_v11, -inf  ;;  %v3797_v14 = vmax.f32 %v3795_v6, %v3796_v10  ;;  %v6023_v15 = vpop.f32.mrb[51].mxu1 }
 0x2d4   : > { %v3802_v16 = vsel %vm342_vm0, %v6023_v15, -inf }
 0x2d5   : > { %v3919_v17 = vsub.f32 %v2641_v54, %v3783_v12  ;;  %v3920_v25 = vsub.f32 %v4954_v52, %v3783_v12  ;;  %v3791_v18 = vrot.slane %v3790_v8, 1  ;;  %v3798_v19 = vrot.slane %v3797_v14, 2 }
 0x2d6   : > { %v3804_v20 = vmax.f32 %v3802_v16, %v3803_v13  ;;  %v6027_v21 = vpop.f32.mrb[52].mxu0 }
 0x2d7   : > { %v3951_v22 = vmul.f32 1.442695, %v3919_v17  ;;  %v3953_v23 = vmul.f32 1.442695, %v3920_v25  ;;  %v3792_v26 = vmax.f32 %v3790_v8, %v3791_v18  ;;  %v3799_v27 = vmax.f32 %v3797_v14, %v3798_v19  ;;  %v6029_v28 = vpop.f32.mrb[53].mxu0 }
 0x2d8   : > { %v3805_v29 = vrot.slane %v3804_v20, 4  ;;  %v3812_v30 = vsel %vm342_vm0, %v6027_v21, -inf  ;;  %v3811_v31 = vsel %vm342_vm0, %v6029_v28, -inf }
 0x2d9   : > { %5397 = vpow2.f32 %v3951_v22  ;;  %v3921_v32 = vsub.f32 %v2716_v59, %v3792_v26  ;;  %v3922_v33 = vsub.f32 %v4961_v57, %v3792_v26  ;;  %v3800_v34 = vrot.slane %v3799_v27, 1 }
 0x2da   : > { %5399 = vpow2.f32 %v3953_v23  ;;  %v3806_v35 = vmax.f32 %v3804_v20, %v3805_v29  ;;  %v6035_v36 = vpop.f32.mrb[52].mxu1  ;;  %v3813_v37 = vmax.f32 %v3811_v31, %v3812_v30 }
 0x2db   : > { %v3955_v38 = vmul.f32 1.442695, %v3921_v32  ;;  %v3957_v40 = vmul.f32 1.442695, %v3922_v33  ;;  %v3801_v41 = vmax.f32 %v3799_v27, %v3800_v34  ;;  %v3821_v42 = vsel %vm342_vm0, %v6035_v36, -inf  ;;  %v6039_v43 = vpop.f32.mrb[53].mxu1 }
 0x2dc   : > { %v3807_v44 = vrot.slane %v3806_v35, 2  ;;  %v3814_v45 = vrot.slane %v3813_v37, 4  ;;  %v3820_v46 = vsel %vm342_vm0, %v6039_v43, -inf }
 0x2dd   : > { %5401 = vpow2.f32 %v3955_v38  ;;  %v3923_v47 = vsub.f32 %v2791_v2, %v3801_v41  ;;  %v3924_v48 = vsub.f32 %v4968_v63, %v3801_v41  ;;  %v3822_v49 = vmax.f32 %v3820_v46, %v3821_v42  ;;  %v6043_v50 = vpop.f32.mrb[54].mxu0 }
 0x2de   : > { %5403 = vpow2.f32 %v3957_v40  ;;  %v3808_v51 = vmax.f32 %v3806_v35, %v3807_v44  ;;  %v3815_v52 = vmax.f32 %v3813_v37, %v3814_v45  ;;  %v3830_v53 = vsel %vm342_vm0, %v6043_v50, -inf  ;;  %v6047_v54 = vpop.f32.mrb[55].mxu0 }
 0x2df   : > { %v3959_v55 = vmul.f32 1.442695, %v3923_v47  ;;  %v3961_v56 = vmul.f32 1.442695, %v3924_v48  ;;  %v3823_v57 = vrot.slane %v3822_v49, 4  ;;  %v3829_v24 = vsel %vm342_vm0, %v6047_v54, -inf }
 0x2e0   : > { %v3809_v58 = vrot.slane %v3808_v51, 1  ;;  %v3816_v59 = vrot.slane %v3815_v52, 2  ;;  %v3831_v60 = vmax.f32 %v3829_v24, %v3830_v53 }
 0x2e1   : > { %5405 = vpow2.f32 %v3959_v55  ;;  %v3824_v61 = vmax.f32 %v3822_v49, %v3823_v57 }
 0x2e2   : > { %5407 = vpow2.f32 %v3961_v56  ;;  %v3810_v62 = vmax.f32 %v3808_v51, %v3809_v58  ;;  %v3817_v63 = vmax.f32 %v3815_v52, %v3816_v59  ;;  %v6051_v0 = vpop.f32.mrb[54].mxu1  ;;  %v3832_v1 = vrot.slane %v3831_v60, 4 }
 0x2e3   : > { %v6053_v39 = vpop.eup %5397  ;;  %v3825_v2 = vrot.slane %v3824_v61, 2  ;;  %v3839_v3 = vsel %vm342_vm0, %v6051_v0, -inf  ;;  %v6057_v4 = vpop.f32.mrb[55].mxu1 }
 0x2e4   : > { %v6059_v5 = vpop.eup %5399  ;;  %v4015_v6 = vsel %vm342_vm0, %v6053_v39, 0.0  ;;  %v3925_v7 = vsub.f32 %v6023_v15, %v3810_v62  ;;  %v3926_v9 = vsub.f32 %v6019_v11, %v3810_v62  ;;  %v3818_v10 = vrot.slane %v3817_v63, 1 }
 0x2e5   : > { %v4016_v12 = vsel %vm342_vm0, %v6059_v5, 0.0  ;;  %v3826_v8 = vmax.f32 %v3824_v61, %v3825_v2  ;;  %v3833_v13 = vmax.f32 %v3831_v60, %v3832_v1  ;;  %v3838_v14 = vsel %vm342_vm0, %v6057_v4, -inf }
 0x2e6   : > { %v4017_v16 = vadd.f32 %v4016_v12, %v4015_v6  ;;  %v3963_v17 = vmul.f32 1.442695, %v3925_v7  ;;  %v3965_v25 = vmul.f32 1.442695, %v3926_v9  ;;  %v3819_v18 = vmax.f32 %v3817_v63, %v3818_v10  ;;  %v6069_v19 = vpop.f32.mrb[56].mxu0 }
 0x2e7   : > { %v6071_v20 = vpop.eup %5401  ;;  %v3827_v15 = vrot.slane %v3826_v8, 1  ;;  %v3834_v22 = vrot.slane %v3833_v13, 2  ;;  %v3840_v11 = vmax.f32 %v3838_v14, %v3839_v3  ;;  %v3848_v23 = vsel %vm342_vm0, %v6069_v19, -inf  ;;  %v6075_v26 = vpop.f32.mrb[57].mxu0 }
 0x2e8   : > { %v6077_v27 = vpop.eup %5403  ;;  %v4018_v29 = vrot.slane %v4017_v16, 4  ;;  %v4024_v30 = vsel %vm342_vm0, %v6071_v20, 0.0  ;;  %5409 = vpow2.f32 %v3963_v17  ;;  %v3927_v31 = vsub.f32 %v6029_v28, %v3819_v18 }
 0x2e9   : > { %v4025_v32 = vsel %vm342_vm0, %v6077_v27, 0.0  ;;  %5411 = vpow2.f32 %v3965_v25  ;;  %v3928_v33 = vsub.f32 %v6027_v21, %v3819_v18  ;;  %v3828_v34 = vmax.f32 %v3826_v8, %v3827_v15 }
 0x2ea   : > { %v4019_v35 = vadd.f32 %v4018_v29, %v4017_v16  ;;  %v4026_v37 = vadd.f32 %v4025_v32, %v4024_v30  ;;  %v3967_v38 = vmul.f32 1.442695, %v3927_v31  ;;  %v3835_v40 = vmax.f32 %v3833_v13, %v3834_v22 }
 0x2eb   : > { %v6085_v41 = vpop.eup %5405  ;;  %v3969_v42 = vmul.f32 1.442695, %v3928_v33  ;;  %v3929_v44 = vsub.f32 %v6039_v43, %v3828_v34  ;;  %v3930_v45 = vsub.f32 %v6035_v36, %v3828_v34  ;;  %v3841_v46 = vrot.slane %v3840_v11, 4  ;;  %v6089_v28 = vpop.f32.mrb[56].mxu1 }
 0x2ec   : > { %v6091_v47 = vpop.eup %5407  ;;  %v4020_v48 = vrot.slane %v4019_v35, 2  ;;  %v4027_v49 = vrot.slane %v4026_v37, 4  ;;  %v4033_v21 = vsel %vm342_vm0, %v6085_v41, 0.0  ;;  %5413 = vpow2.f32 %v3967_v38  ;;  %v6095_v51 = vpop.f32.mrb[57].mxu1 }
 0x2ed   : > { %v4034_v52 = vsel %vm342_vm0, %v6091_v47, 0.0  ;;  %5415 = vpow2.f32 %v3969_v42  ;;  %v3971_v43 = vmul.f32 1.442695, %v3929_v44  ;;  %v3973_v53 = vmul.f32 1.442695, %v3930_v45  ;;  %v6099_v36 = vpop.f32.mrb[58].mxu0 }
 0x2ee   : > { %v4021_v55 = vadd.f32 %v4020_v48, %v4019_v35  ;;  %v4028_v56 = vadd.f32 %v4027_v49, %v4026_v37  ;;  %v4035_v57 = vadd.f32 %v4034_v52, %v4033_v21  ;;  %v3836_v24 = vrot.slane %v3835_v40, 1  ;;  %v6101_v58 = vpop.f32.mrb[59].mxu0 }
 0x2ef   : > { %5417 = vpow2.f32 %v3971_v43  ;;  %v3842_v59 = vmax.f32 %v3840_v11, %v3841_v46  ;;  %v3857_v60 = vsel %vm342_vm0, %v6089_v28, -inf  ;;  %v3847_v61 = vsel %vm342_vm0, %v6075_v26, -inf }
 0x2f0   : > { %v4022_v62 = vrot.slane %v4021_v55, 1  ;;  %v4029_v63 = vrot.slane %v4028_v56, 2  ;;  %v4036_v1 = vrot.slane %v4035_v57, 4  ;;  %5419 = vpow2.f32 %v3973_v53 }
 0x2f1   : > { %v3837_v2 = vmax.f32 %v3835_v40, %v3836_v24  ;;  %v3843_v3 = vrot.slane %v3842_v59, 2  ;;  %v3849_v6 = vmax.f32 %v3847_v61, %v3848_v23  ;;  %v3856_v7 = vsel %vm342_vm0, %v6095_v51, -inf  ;;  %v6109_v9 = vpop.f32.mrb[58].mxu1 }
 0x2f2   : > { %v6111_v10 = vpop.eup %5409  ;;  %v4023_v12 = vadd.f32 %v4022_v62, %v4021_v55  ;;  %v4030_v8 = vadd.f32 %v4029_v63, %v4028_v56  ;;  %v4037_v13 = vadd.f32 %v4036_v1, %v4035_v57  ;;  %v3858_v14 = vmax.f32 %v3856_v7, %v3857_v60  ;;  %v6113_v16 = vpop.f32.mrb[59].mxu1 }
 0x2f3   : > { %v6115_v17 = vpop.eup %5411  ;;  %v4042_v25 = vsel %vm342_vm0, %v6111_v10, 0.0  ;;  %v3931_v18 = vsub.f32 %v6047_v54, %v3837_v2  ;;  %v3932_v15 = vsub.f32 %v6043_v50, %v3837_v2  ;;  %v3844_v22 = vmax.f32 %v3842_v59, %v3843_v3 }
 0x2f4   : > { %5421 = vrcp.f32 %v4023_v12  ;;  %v4031_v11 = vrot.slane %v4030_v8, 1  ;;  %v4038_v23 = vrot.slane %v4037_v13, 2  ;;  %v4043_v29 = vsel %vm342_vm0, %v6115_v17, 0.0 }
 0x2f5   : > { %v4044_v30 = vadd.f32 %v4043_v29, %v4042_v25  ;;  %v3975_v31 = vmul.f32 1.442695, %v3931_v18  ;;  %v3977_v32 = vmul.f32 1.442695, %v3932_v15  ;;  %v3845_v33 = vrot.slane %v3844_v22, 1  ;;  %v6123_v34 = vpop.f32.mrb[60].mxu0 }
 0x2f6   : > { %v6125_v35 = vpop.eup %5413  ;;  %v4032_v37 = vadd.f32 %v4031_v11, %v4030_v8  ;;  %v4039_v54 = vadd.f32 %v4038_v23, %v4037_v13  ;;  %v3850_v38 = vrot.slane %v3849_v6, 4  ;;  %v3859_v50 = vrot.slane %v3858_v14, 4  ;;  %v6127_v40 = vpop.f32.mrb[61].mxu0 }
 0x2f7   : > { %v6129_v42 = vpop.eup %5415  ;;  %v4045_v44 = vrot.slane %v4044_v30, 4  ;;  %v4051_v45 = vsel %vm342_vm0, %v6125_v35, 0.0  ;;  %5423 = vpow2.f32 %v3975_v31  ;;  %v3846_v46 = vmax.f32 %v3844_v22, %v3845_v33 }
 0x2f8   : > { %5425 = vrcp.f32 %v4032_v37  ;;  %v4040_v48 = vrot.slane %v4039_v54, 1  ;;  %v4052_v49 = vsel %vm342_vm0, %v6129_v42, 0.0  ;;  %v3851_v21 = vmax.f32 %v3849_v6, %v3850_v38 }
 0x2f9   : > { %v6136_v52 = vpop.eup %5417  ;;  %v4046_v43 = vadd.f32 %v4045_v44, %v4044_v30  ;;  %v4053_v53 = vadd.f32 %v4052_v49, %v4051_v45  ;;  %5427 = vpow2.f32 %v3977_v32  ;;  %v3933_v55 = vsub.f32 %v6057_v4, %v3846_v46 }
 0x2fa   : > { %v6139_v56 = vpop.eup %5419  ;;  %v4041_v57 = vadd.f32 %v4040_v48, %v4039_v54  ;;  %v4060_v24 = vsel %vm342_vm0, %v6136_v52, 0.0  ;;  %v3934_v59 = vsub.f32 %v6051_v0, %v3846_v46  ;;  %v3852_v60 = vrot.slane %v3851_v21, 2 }
 0x2fb   : > { %v4047_v61 = vrot.slane %v4046_v43, 2  ;;  %v4054_v62 = vrot.slane %v4053_v53, 4  ;;  %v4061_v63 = vsel %vm342_vm0, %v6139_v56, 0.0  ;;  %v3979_v1 = vmul.f32 1.442695, %v3933_v55  ;;  %v6150_v2 = vpop.f32.mrb[60].mxu1 }
 0x2fc   : > { %5429 = vrcp.f32 %v4041_v57  ;;  %v4062_v4 = vadd.f32 %v4061_v63, %v4060_v24  ;;  %v3981_v3 = vmul.f32 1.442695, %v3934_v59  ;;  %v3853_v6 = vmax.f32 %v3851_v21, %v3852_v60  ;;  %v6152_v7 = vpop.f32.mrb[61].mxu1 }
 0x2fd   : > { %v4048_v12 = vadd.f32 %v4047_v61, %v4046_v43  ;;  %v4055_v8 = vadd.f32 %v4054_v62, %v4053_v53  ;;  %5431 = vpow2.f32 %v3979_v1  ;;  %v3860_v13 = vmax.f32 %v3858_v14, %v3859_v50 }
 0x2fe   : > { %v5422_v0 = vpop.eup %5421  ;;  %v4063_v25 = vrot.slane %v4062_v4, 4  ;;  %5433 = vpow2.f32 %v3981_v3  ;;  %v3854_v18 = vrot.slane %v3853_v6, 1  ;;  %v3866_v15 = vsel %vm342_vm0, %v6099_v36, -inf }
 0x2ff   : > { %v4160_v22 = vmul.f32 %v5422_v0, %v6053_v39  ;;  %v4161_v11 = vmul.f32 %v5422_v0, %v6059_v5  ;;  %v4049_v23 = vrot.slane %v4048_v12, 1  ;;  %v4056_v29 = vrot.slane %v4055_v8, 2 }
 0x300   : > { %v4064_v30 = vadd.f32 %v4063_v25, %v4062_v4  ;;  %v3855_v31 = vmax.f32 %v3853_v6, %v3854_v18  ;;  %v3861_v32 = vrot.slane %v3860_v13, 2  ;;  %v3875_v14 = vsel %vm342_vm0, %v6109_v9, -inf  ;;  %v6160_v33 = vpop.f32.mrb[62].mxu0 }
 0x301   : > { %v6162_v37 = vpop.eup %5423  ;;  %4207 = vst.msk [vmem:[%s6165_s20] sm:$0xff] %vm342_vm0, %v4160_v22  ;;  %4208 = vst.msk [vmem:[%s6165_s20 + $0x8] sm:$0xff] %vm342_vm0, %v4161_v11  ;;  %v4050_v39 = vadd.f32 %v4049_v23, %v4048_v12  ;;  %v4057_v5 = vadd.f32 %v4056_v29, %v4055_v8  ;;  %v3865_v54 = vsel %vm342_vm0, %v6101_v58, -inf  ;;  %v3874_v38 = vsel %vm342_vm0, %v6113_v16, -inf  ;;  %v6175_v50 = vpop.f32.mrb[63].mxu0 }
 0x302   : > { %v5426_v44 = vpop.eup %5425  ;;  %v4065_v45 = vrot.slane %v4064_v30, 2  ;;  %v4069_v46 = vsel %vm342_vm0, %v6162_v37, 0.0  ;;  %v3935_v48 = vsub.f32 %v6075_v26, %v3855_v31  ;;  %v3936_v49 = vsub.f32 %v6069_v19, %v3855_v31 }
 0x303   : > { %v6181_v21 = vpop.eup %5427  ;;  %v4163_v43 = vmul.f32 %v5426_v44, %v6071_v20  ;;  %v4164_v53 = vmul.f32 %v5426_v44, %v6077_v27  ;;  %5435 = vrcp.f32 %v4050_v39  ;;  %v4058_v55 = vrot.slane %v4057_v5, 1  ;;  %v6185_v57 = vpop.f32.mrb[62].mxu1 }
 0x304   : > { %v4066_v24 = vadd.f32 %v4065_v45, %v4064_v30  ;;  %v4070_v59 = vsel %vm342_vm0, %v6181_v21, 0.0  ;;  %v3983_v60 = vmul.f32 1.442695, %v3935_v48  ;;  %v3985_v61 = vmul.f32 1.442695, %v3936_v49  ;;  %v6189_v62 = vpop.f32.mrb[63].mxu1 }
 0x305   : > { %4209 = vst.msk [vmem:[%s6165_s20 + $0x10] sm:$0xff] %vm342_vm0, %v4163_v43  ;;  %4210 = vst.msk [vmem:[%s6165_s20 + $0x18] sm:$0xff] %vm342_vm0, %v4164_v53  ;;  %v4059_v19 = vadd.f32 %v4058_v55, %v4057_v5  ;;  %v4071_v20 = vadd.f32 %v4070_v59, %v4069_v46  ;;  %v3862_v26 = vmax.f32 %v3860_v13, %v3861_v32  ;;  %v3884_v3 = vsel %vm342_vm0, %v6123_v34, -inf }
 0x306   : > { %v3867_v27 = vmax.f32 %v3865_v54, %v3866_v15  ;;  %v5430_v63 = vpop.eup %5429  ;;  %v4067_v1 = vrot.slane %v4066_v24, 1  ;;  %5437 = vpow2.f32 %v3983_v60  ;;  %v3876_v4 = vmax.f32 %v3874_v38, %v3875_v14 }
 0x307   : > { %v6197_v6 = vpop.eup %5431  ;;  %v4166_v12 = vmul.f32 %v5430_v63, %v6085_v41  ;;  %v4167_v8 = vmul.f32 %v5430_v63, %v6091_v47  ;;  %5439 = vrcp.f32 %v4059_v19  ;;  %v4072_v0 = vrot.slane %v4071_v20, 4 }
 0x308   : > { %v6201_v25 = vpop.eup %5433  ;;  %v4068_v13 = vadd.f32 %v4067_v1, %v4066_v24  ;;  %v4078_v18 = vsel %vm342_vm0, %v6197_v6, 0.0  ;;  %5441 = vpow2.f32 %v3985_v61  ;;  %v3863_v15 = vrot.slane %v3862_v26, 1 }
 0x309   : > { %4211 = vst.msk [vmem:[%s6165_s20 + $0x20] sm:$0xff] %vm342_vm0, %v4166_v12  ;;  %4212 = vst.msk [vmem:[%s6165_s20 + $0x28] sm:$0xff] %vm342_vm0, %v4167_v8  ;;  %v4073_v22 = vadd.f32 %v4072_v0, %v4071_v20  ;;  %v4079_v41 = vsel %vm342_vm0, %v6201_v25, 0.0  ;;  %v3868_v11 = vrot.slane %v3867_v27, 4  ;;  %v3877_v47 = vrot.slane %v3876_v4, 4 }
 0x30a   : > { %5443 = vrcp.f32 %v4068_v13  ;;  %v4080_v23 = vadd.f32 %v4079_v41, %v4078_v18  ;;  %v3864_v29 = vmax.f32 %v3862_v26, %v3863_v15  ;;  %v3893_v30 = vsel %vm342_vm0, %v6150_v2, -inf }
 0x30b   : > { %v4074_v31 = vrot.slane %v4073_v22, 2  ;;  %v3869_v32 = vmax.f32 %v3867_v27, %v3868_v11  ;;  %v3878_v14 = vmax.f32 %v3876_v4, %v3877_v47  ;;  %v3883_v39 = vsel %vm342_vm0, %v6127_v40, -inf }
 0x30c   : > { %v4081_v5 = vrot.slane %v4080_v23, 4  ;;  %v3937_v54 = vsub.f32 %v6095_v51, %v3864_v29  ;;  %v3938_v38 = vsub.f32 %v6089_v28, %v3864_v29  ;;  %v3885_v44 = vmax.f32 %v3883_v39, %v3884_v3 }
 0x30d   : > { %v5436_v45 = vpop.eup %5435  ;;  %v4075_v46 = vadd.f32 %v4074_v31, %v4073_v22  ;;  %v3870_v48 = vrot.slane %v3869_v32, 2  ;;  %v3879_v49 = vrot.slane %v3878_v14, 2  ;;  %v3892_v43 = vsel %vm342_vm0, %v6152_v7, -inf }
 0x30e   : > { %v4169_v53 = vmul.f32 %v5436_v45, %v6111_v10  ;;  %v4170_v55 = vmul.f32 %v5436_v45, %v6115_v17  ;;  %v4082_v24 = vadd.f32 %v4081_v5, %v4080_v23  ;;  %v3987_v59 = vmul.f32 1.442695, %v3937_v54 }
 0x30f   : > { %v4076_v60 = vrot.slane %v4075_v46, 1  ;;  %v3989_v51 = vmul.f32 1.442695, %v3938_v38  ;;  %v3871_v61 = vmax.f32 %v3869_v32, %v3870_v48  ;;  %v3880_v28 = vmax.f32 %v3878_v14, %v3879_v49 }
 0x310   : > { %v6221_v19 = vpop.eup %5437  ;;  %4213 = vst.msk [vmem:[%s6165_s20 + $0x30] sm:$0xff] %vm342_vm0, %v4169_v53  ;;  %4214 = vst.msk [vmem:[%s6165_s20 + $0x38] sm:$0xff] %vm342_vm0, %v4170_v55  ;;  %v4083_v20 = vrot.slane %v4082_v24, 2  ;;  %5445 = vpow2.f32 %v3987_v59  ;;  %v3886_v26 = vrot.slane %v3885_v44, 4  ;;  %v3894_v27 = vmax.f32 %v3892_v43, %v3893_v30 }
 0x311   : > { %v5440_v10 = vpop.eup %5439  ;;  %v4077_v17 = vadd.f32 %v4076_v60, %v4075_v46  ;;  %v4087_v63 = vsel %vm342_vm0, %v6221_v19, 0.0  ;;  %5447 = vpow2.f32 %v3989_v51  ;;  %v3872_v1 = vrot.slane %v3871_v61, 1 }
 0x312   : > { %v6229_v4 = vpop.eup %5441  ;;  %v4172_v3 = vmul.f32 %v5440_v10, %v6125_v35  ;;  %v4173_v12 = vmul.f32 %v5440_v10, %v6129_v42  ;;  %v4084_v8 = vadd.f32 %v4083_v20, %v4082_v24  ;;  %v3881_v0 = vrot.slane %v3880_v28, 1 }
 0x313   : > { %5449 = vrcp.f32 %v4077_v17  ;;  %v4088_v13 = vsel %vm342_vm0, %v6229_v4, 0.0  ;;  %v3873_v18 = vmax.f32 %v3871_v61, %v3872_v1  ;;  %v3887_v15 = vmax.f32 %v3885_v44, %v3886_v26 }
 0x314   : > { %v5444_v22 = vpop.eup %5443  ;;  %4215 = vst.msk [vmem:[%s6165_s20 + $0x40] sm:$0xff] %vm342_vm0, %v4172_v3  ;;  %4216 = vst.msk [vmem:[%s6165_s20 + $0x48] sm:$0xff] %vm342_vm0, %v4173_v12  ;;  %v4085_v41 = vrot.slane %v4084_v8, 1  ;;  %v4089_v11 = vadd.f32 %v4088_v13, %v4087_v63  ;;  %v3882_v35 = vmax.f32 %v3880_v28, %v3881_v0  ;;  %v3895_v47 = vrot.slane %v3894_v27, 4 }
 0x315   : > { %v4175_v42 = vmul.f32 %v5444_v22, %v6136_v52  ;;  %v4176_v23 = vmul.f32 %v5444_v22, %v6139_v56  ;;  %v3939_v29 = vsub.f32 %v6101_v58, %v3873_v18  ;;  %v3940_v30 = vsub.f32 %v6099_v36, %v3873_v18 }
 0x316   : > { %v4086_v31 = vadd.f32 %v4085_v41, %v4084_v8  ;;  %v4090_v32 = vrot.slane %v4089_v11, 4  ;;  %v3941_v14 = vsub.f32 %v6113_v16, %v3882_v35  ;;  %v3942_v39 = vsub.f32 %v6109_v9, %v3882_v35 }
 0x317   : > { %4217 = vst.msk [vmem:[%s6165_s20 + $0x50] sm:$0xff] %vm342_vm0, %v4175_v42  ;;  %4218 = vst.msk [vmem:[%s6165_s20 + $0x58] sm:$0xff] %vm342_vm0, %v4176_v23  ;;  %v3991_v5 = vmul.f32 1.442695, %v3939_v29  ;;  %v3993_v54 = vmul.f32 1.442695, %v3940_v30  ;;  %v3896_v52 = vmax.f32 %v3894_v27, %v3895_v47 }
 0x318   : > { %v3888_v38 = vrot.slane %v3887_v15, 2  ;;  %5451 = vrcp.f32 %v4086_v31  ;;  %v4091_v56 = vadd.f32 %v4090_v32, %v4089_v11  ;;  %v3995_v44 = vmul.f32 1.442695, %v3941_v14 }
 0x319   : > { %v3997_v58 = vmul.f32 1.442695, %v3942_v39  ;;  %5453 = vpow2.f32 %v3991_v5  ;;  %v3897_v45 = vrot.slane %v3896_v52, 2  ;;  %v3902_v16 = vsel %vm342_vm0, %v6160_v33, -inf }
 0x31a   : > { %v3889_v36 = vmax.f32 %v3887_v15, %v3888_v38  ;;  %v6251_v46 = vpop.eup %5445  ;;  %v4092_v9 = vrot.slane %v4091_v56, 2  ;;  %5455 = vpow2.f32 %v3993_v54  ;;  %v3911_v48 = vsel %vm342_vm0, %v6185_v57, -inf }
 0x31b   : > { %v3901_v49 = vsel %vm342_vm0, %v6175_v50, -inf  ;;  %v6257_v43 = vpop.eup %5447  ;;  %v4096_v53 = vsel %vm342_vm0, %v6251_v46, 0.0  ;;  %5457 = vpow2.f32 %v3995_v44  ;;  %v3898_v24 = vmax.f32 %v3896_v52, %v3897_v45 }
 0x31c   : > { %v3890_v55 = vrot.slane %v3889_v36, 1  ;;  %v4093_v59 = vadd.f32 %v4092_v9, %v4091_v56  ;;  %v4097_v60 = vsel %vm342_vm0, %v6257_v43, 0.0  ;;  %5459 = vpow2.f32 %v3997_v58 }
 0x31d   : > { %v3903_v51 = vmax.f32 %v3901_v49, %v3902_v16  ;;  %v5450_v61 = vpop.eup %5449  ;;  %v4098_v28 = vadd.f32 %v4097_v60, %v4096_v53  ;;  %v3899_v26 = vrot.slane %v3898_v24, 1  ;;  %v3910_v27 = vsel %vm342_vm0, %v6189_v62, -inf }
 0x31e   : > { %v3891_v20 = vmax.f32 %v3889_v36, %v3890_v55  ;;  %v4178_v10 = vmul.f32 %v5450_v61, %v6162_v37  ;;  %v4179_v17 = vmul.f32 %v5450_v61, %v6181_v21  ;;  %v4094_v63 = vrot.slane %v4093_v59, 1 }
 0x31f   : > { %v3904_v1 = vrot.slane %v3903_v51, 4  ;;  %v4099_v3 = vrot.slane %v4098_v28, 4  ;;  %v3900_v0 = vmax.f32 %v3898_v24, %v3899_v26  ;;  %v3912_v15 = vmax.f32 %v3910_v27, %v3911_v48 }
 0x320   : > { %v3943_v12 = vsub.f32 %v6127_v40, %v3891_v20  ;;  %v3944_v8 = vsub.f32 %v6123_v34, %v3891_v20  ;;  %4219 = vst.msk [vmem:[%s6165_s20 + $0x60] sm:$0xff] %vm342_vm0, %v4178_v10  ;;  %4220 = vst.msk [vmem:[%s6165_s20 + $0x68] sm:$0xff] %vm342_vm0, %v4179_v17  ;;  %v4095_v13 = vadd.f32 %v4094_v63, %v4093_v59 }
 0x321   : > { %v3905_v18 = vmax.f32 %v3903_v51, %v3904_v1  ;;  %v4100_v22 = vadd.f32 %v4099_v3, %v4098_v28  ;;  %v3945_v21 = vsub.f32 %v6152_v7, %v3900_v0  ;;  %v3946_v40 = vsub.f32 %v6150_v2, %v3900_v0 }
 0x322   : > { %v3999_v41 = vmul.f32 1.442695, %v3943_v12  ;;  %v4001_v37 = vmul.f32 1.442695, %v3944_v8  ;;  %v5452_v11 = vpop.eup %5451  ;;  %5461 = vrcp.f32 %v4095_v13  ;;  %v3913_v35 = vrot.slane %v3912_v15, 4 }
 0x323   : > { %v3906_v34 = vrot.slane %v3905_v18, 2  ;;  %v6275_v47 = vpop.eup %5453  ;;  %v4181_v42 = vmul.f32 %v5452_v11, %v6197_v6  ;;  %v4182_v23 = vmul.f32 %v5452_v11, %v6201_v25  ;;  %v4101_v29 = vrot.slane %v4100_v22, 2 }
 0x324   : > { %5463 = vpow2.f32 %v3999_v41  ;;  %v6279_v30 = vpop.eup %5455  ;;  %v4105_v7 = vsel %vm342_vm0, %v6275_v47, 0.0  ;;  %v4003_v31 = vmul.f32 1.442695, %v3945_v21  ;;  %v4005_v32 = vmul.f32 1.442695, %v3946_v40 }
 0x325   : > { %5465 = vpow2.f32 %v4001_v37  ;;  %v6283_v14 = vpop.eup %5457  ;;  %4221 = vst.msk [vmem:[%s6165_s20 + $0x70] sm:$0xff] %vm342_vm0, %v4181_v42  ;;  %4222 = vst.msk [vmem:[%s6165_s20 + $0x78] sm:$0xff] %vm342_vm0, %v4182_v23  ;;  %v4102_v2 = vadd.f32 %v4101_v29, %v4100_v22  ;;  %v4106_v6 = vsel %vm342_vm0, %v6279_v30, 0.0  ;;  %v3907_v25 = vmax.f32 %v3905_v18, %v3906_v34 }
 0x326   : > { %v3914_v39 = vmax.f32 %v3912_v15, %v3913_v35  ;;  %v6291_v5 = vpop.eup %5459  ;;  %v4107_v54 = vadd.f32 %v4106_v6, %v4105_v7  ;;  %v4114_v38 = vsel %vm342_vm0, %v6283_v14, 0.0  ;;  %5467 = vpow2.f32 %v4003_v31 }
 0x327   : > { %v4103_v52 = vrot.slane %v4102_v2, 1  ;;  %v4115_v56 = vsel %vm342_vm0, %v6291_v5, 0.0  ;;  %5469 = vpow2.f32 %v4005_v32  ;;  %v3908_v44 = vrot.slane %v3907_v25, 1 }
 0x328   : > { %v4108_v58 = vrot.slane %v4107_v54, 4  ;;  %v4116_v36 = vadd.f32 %v4115_v56, %v4114_v38  ;;  %v3915_v45 = vrot.slane %v3914_v39, 2 }
 0x329   : > { %v4104_v16 = vadd.f32 %v4103_v52, %v4102_v2  ;;  %v3909_v9 = vmax.f32 %v3907_v25, %v3908_v44 }
 0x32a   : > { %v4109_v48 = vadd.f32 %v4108_v58, %v4107_v54  ;;  %v4117_v49 = vrot.slane %v4116_v36, 4  ;;  %v3916_v53 = vmax.f32 %v3914_v39, %v3915_v45 }
 0x32b   : > { %5471 = vrcp.f32 %v4104_v16  ;;  %v3947_v55 = vsub.f32 %v6175_v50, %v3909_v9  ;;  %v3948_v24 = vsub.f32 %v6160_v33, %v3909_v9 }
 0x32c   : > { %v5462_v59 = vpop.eup %5461  ;;  %v4110_v60 = vrot.slane %v4109_v48, 2  ;;  %v4118_v51 = vadd.f32 %v4117_v49, %v4116_v36  ;;  %v3917_v61 = vrot.slane %v3916_v53, 1 }
 0x32d   : > { %v4184_v20 = vmul.f32 %v5462_v59, %v6221_v19  ;;  %v4185_v26 = vmul.f32 %v5462_v59, %v6229_v4  ;;  %v4007_v27 = vmul.f32 1.442695, %v3947_v55  ;;  %v4009_v10 = vmul.f32 1.442695, %v3948_v24 }
 0x32e   : > { %v6299_v28 = vpop.eup %5463  ;;  %v4111_v63 = vadd.f32 %v4110_v60, %v4109_v48  ;;  %v4119_v50 = vrot.slane %v4118_v51, 2  ;;  %v3918_v1 = vmax.f32 %v3916_v53, %v3917_v61 }
 0x32f   : > { %v6303_v17 = vpop.eup %5465  ;;  %v4123_v33 = vsel %vm342_vm0, %v6299_v28, 0.0  ;;  %4223 = vst.msk [vmem:[%s6165_s20 + $0x80] sm:$0xff] %vm342_vm0, %v4184_v20  ;;  %4224 = vst.msk [vmem:[%s6165_s20 + $0x88] sm:$0xff] %vm342_vm0, %v4185_v26  ;;  %5473 = vpow2.f32 %v4007_v27 }
 0x330   : > { %v4124_v3 = vsel %vm342_vm0, %v6303_v17, 0.0  ;;  %v6313_v19 = vpop.eup %5467  ;;  %v4112_v4 = vrot.slane %v4111_v63, 1  ;;  %v4120_v12 = vadd.f32 %v4119_v50, %v4118_v51  ;;  %5475 = vpow2.f32 %v4009_v10 }
 0x331   : > { %v4125_v8 = vadd.f32 %v4124_v3, %v4123_v33  ;;  %v6315_v0 = vpop.eup %5469  ;;  %v4132_v13 = vsel %vm342_vm0, %v6313_v19, 0.0  ;;  %v3949_v18 = vsub.f32 %v6189_v62, %v3918_v1  ;;  %v3950_v15 = vsub.f32 %v6185_v57, %v3918_v1 }
 0x332   : > { %v4113_v22 = vadd.f32 %v4112_v4, %v4111_v63  ;;  %v4121_v41 = vrot.slane %v4120_v12, 1  ;;  %v4133_v21 = vsel %vm342_vm0, %v6315_v0, 0.0 }
 0x333   : > { %v4126_v37 = vrot.slane %v4125_v8, 4  ;;  %v4134_v11 = vadd.f32 %v4133_v21, %v4132_v13  ;;  %v4011_v40 = vmul.f32 1.442695, %v3949_v18  ;;  %v4013_v34 = vmul.f32 1.442695, %v3950_v15 }
 0x334   : > { %5477 = vrcp.f32 %v4113_v22  ;;  %v4122_v35 = vadd.f32 %v4121_v41, %v4120_v12 }
 0x335   : > { %v4127_v42 = vadd.f32 %v4126_v37, %v4125_v8  ;;  %v5472_v23 = vpop.eup %5471  ;;  %v4135_v29 = vrot.slane %v4134_v11, 4  ;;  %5479 = vpow2.f32 %v4011_v40 }
 0x336   : > { %v4187_v62 = vmul.f32 %v5472_v23, %v6251_v46  ;;  %v4188_v57 = vmul.f32 %v5472_v23, %v6257_v43  ;;  %5481 = vrcp.f32 %v4122_v35 }
 0x337   : > { %v4128_v7 = vrot.slane %v4127_v42, 2  ;;  %v4136_v31 = vadd.f32 %v4135_v29, %v4134_v11  ;;  %5483 = vpow2.f32 %v4013_v34 }
 0x338   : > { %4225 = vst.msk [vmem:[%s6165_s20 + $0x90] sm:$0xff] %vm342_vm0, %v4187_v62  ;;  %4226 = vst.msk [vmem:[%s6165_s20 + $0x98] sm:$0xff] %vm342_vm0, %v4188_v57 }
 0x339   : > { %v4129_v32 = vadd.f32 %v4128_v7, %v4127_v42  ;;  %v5474_v2 = vpop.eup %5473  ;;  %v4137_v6 = vrot.slane %v4136_v31, 2 }
 0x33a   : > { %v5476_v25 = vpop.eup %5475  ;;  %v4141_v54 = vsel %vm342_vm0, %v5474_v2, 0.0 }
 0x33b   : > { %v4130_v39 = vrot.slane %v4129_v32, 1  ;;  %v4138_v38 = vadd.f32 %v4137_v6, %v4136_v31  ;;  %v4142_v46 = vsel %vm342_vm0, %v5476_v25, 0.0 }
 0x33c   : > { %v4143_v52 = vadd.f32 %v4142_v46, %v4141_v54 }
 0x33d   : > { %v4131_v43 = vadd.f32 %v4130_v39, %v4129_v32  ;;  %v4139_v56 = vrot.slane %v4138_v38, 1 }
 0x33e   : > { %v5478_v44 = vpop.eup %5477  ;;  %v4144_v58 = vrot.slane %v4143_v52, 4 }
 0x33f   : > { %5485 = vrcp.f32 %v4131_v43  ;;  %v5480_v36 = vpop.eup %5479  ;;  %v4190_v45 = vmul.f32 %v5478_v44, %v6275_v47  ;;  %v4191_v16 = vmul.f32 %v5478_v44, %v6279_v30  ;;  %v4140_v9 = vadd.f32 %v4139_v56, %v4138_v38 }
 0x340   : > { %v5482_v48 = vpop.eup %5481  ;;  %v4145_v49 = vadd.f32 %v4144_v58, %v4143_v52  ;;  %v4150_v53 = vsel %vm342_vm0, %v5480_v36, 0.0 }
 0x341   : > { %v5484_v55 = vpop.eup %5483  ;;  %4227 = vst.msk [vmem:[%s6165_s20 + $0xa0] sm:$0xff] %vm342_vm0, %v4190_v45  ;;  %4228 = vst.msk [vmem:[%s6165_s20 + $0xa8] sm:$0xff] %vm342_vm0, %v4191_v16  ;;  %v4193_v24 = vmul.f32 %v5482_v48, %v6283_v14  ;;  %v4194_v59 = vmul.f32 %v5482_v48, %v6291_v5  ;;  %5487 = vrcp.f32 %v4140_v9 }
 0x342   : > { %v4146_v60 = vrot.slane %v4145_v49, 2  ;;  %v4151_v47 = vsel %vm342_vm0, %v5484_v55, 0.0 }
 0x343   : > { %4229 = vst.msk [vmem:[%s6165_s20 + $0xb0] sm:$0xff] %vm342_vm0, %v4193_v24  ;;  %4230 = vst.msk [vmem:[%s6165_s20 + $0xb8] sm:$0xff] %vm342_vm0, %v4194_v59  ;;  %v4152_v30 = vadd.f32 %v4151_v47, %v4150_v53 }
 0x344   : > { %v4147_v51 = vadd.f32 %v4146_v60, %v4145_v49 }
 0x345   : > { %v4153_v61 = vrot.slane %v4152_v30, 4 }
 0x346   : > { %v4148_v20 = vrot.slane %v4147_v51, 1 }
 0x347   : > { %v4154_v26 = vadd.f32 %v4153_v61, %v4152_v30 }
 0x348   : > { %v4149_v27 = vadd.f32 %v4148_v20, %v4147_v51 }
 0x349   : > { %v5486_v14 = vpop.eup %5485  ;;  %v4155_v63 = vrot.slane %v4154_v26, 2 }
 0x34a   : > { %v4196_v5 = vmul.f32 %v5486_v14, %v6299_v28  ;;  %v4197_v10 = vmul.f32 %v5486_v14, %v6303_v17  ;;  %5489 = vrcp.f32 %v4149_v27 }
 0x34b   : > { %v5488_v50 = vpop.eup %5487  ;;  %v4156_v33 = vadd.f32 %v4155_v63, %v4154_v26 }
 0x34c   : > { %4231 = vst.msk [vmem:[%s6165_s20 + $0xc0] sm:$0xff] %vm342_vm0, %v4196_v5  ;;  %4232 = vst.msk [vmem:[%s6165_s20 + $0xc8] sm:$0xff] %vm342_vm0, %v4197_v10  ;;  %v4199_v1 = vmul.f32 %v5488_v50, %v6313_v19  ;;  %v4200_v3 = vmul.f32 %v5488_v50, %v6315_v0 }
 0x34d   : > { %v4157_v4 = vrot.slane %v4156_v33, 1 }
 0x34e   : > { %4233 = vst.msk [vmem:[%s6165_s20 + $0xd0] sm:$0xff] %vm342_vm0, %v4199_v1  ;;  %4234 = vst.msk [vmem:[%s6165_s20 + $0xd8] sm:$0xff] %vm342_vm0, %v4200_v3 }
 0x34f   : > { %v4158_v28 = vadd.f32 %v4157_v4, %v4156_v33 }
 0x351   : > { %5491 = vrcp.f32 %v4158_v28 }
 0x354   : > { %v5490_v17 = vpop.eup %5489 }
 0x355   : > { %v4202_v12 = vmul.f32 %v5490_v17, %v5474_v2  ;;  %v4203_v8 = vmul.f32 %v5490_v17, %v5476_v25 }
 0x357   : > { %4235 = vst.msk [vmem:[%s6165_s20 + $0xe0] sm:$0xff] %vm342_vm0, %v4202_v12  ;;  %4236 = vst.msk [vmem:[%s6165_s20 + $0xe8] sm:$0xff] %vm342_vm0, %v4203_v8 }
 0x35b   : > { %v5492_v19 = vpop.eup %5491 }
 0x35c   : > { %v4205_v0 = vmul.f32 %v5492_v19, %v5480_v36  ;;  %v4206_v13 = vmul.f32 %v5492_v19, %v5484_v55 }
 0x35e   : > { %4237 = vst.msk [vmem:[%s6165_s20 + $0xf0] sm:$0xff] %vm342_vm0, %v4205_v0  ;;  %4238 = vst.msk [vmem:[%s6165_s20 + $0xf8] sm:$0xff] %vm342_vm0, %v4206_v13 }
 0x35f   : > { %5506 = shalt.err (!%p5503_p3)
}
 0x360   : > { %s5507_s15 = scalar_lea.hbm %s6366_s10, 4096  ;;  %s5511_s18 = scalar_lea.hbm %s6423_s6, 8192 }
 0x361   : > { %p5508_p4 = scmp.ne.s32.totalorder %s6366_s10, %s5507_s15  ;;  %p5512_p9 = scmp.lt.u32.totalorder %s6366_s10, %s6423_s6 }
 0x362   : > { %p5513_p10 = scmp.lt.u32.totalorder %s5511_s18, %s5507_s15  ;;  %p5515_p12 = scmp.lt.u32.totalorder %s5507_s15, %s6366_s10 }
 0x363   : > { %p5509_p7 = pnand %p5508_p4, %p5633_p5 }
 0x364   : > { %p5514_p11 = por %p5513_p10, %p5512_p9 }
 0x365   : > { %p5510_p8 = pneg %p5509_p7 }
 0x366   : > { %p5516_p13 = por %p5515_p12, %p5514_p11 }
 0x368   : > { %p5517_p0 = pnand %p5516_p13, %p5510_p8 }
 0x36a   : > { %5520 = shalt.err (!%p5517_p0)
}
 0x36b   : > { %s5558_s26 = smov 128   ;;  %s5559_s29 = smov 8  }
 0x36c   : > { %5228 = dma.vmem_to_hbm [thread:$0]  (%p5633_p5), %s6368_s28, 4096, %s6366_s10, %s6376_s25, %s5558_s26, %s5558_s26, %s5559_s29  }
 0x36d PF: > { %p5234_p1 = scmp.ge.s32.totalorder %s5555_s24, 2  ;;  %s4268_s9 = sand.u32 1, %s5543_s21  }
 0x36e   : > { %s4269_s11 = scalar_lea.sflag [#allocation3], %s4268_s9 }
 0x36f   : > { %p5231_p2 = pnand %p5234_p1, %p5637_p6 }
 0x371   : > { %5538 = dma.done.wait (!%p5231_p2), %s4269_s11, 4096  }
 0x372   : > { %5540 = vsyncadd (!%p5231_p2), %s4269_s11, 4294963200  ;;  %p16_p3 = scmp.ge.s32.totalorder %s5620_s27, 4   ;;  %s6428_s21 = smov %s5547_s22 }
 0x373   : > { %s6429_s22 = smov %s5551_s23  ;;  %s6430_s23 = smov %s5631_s30 }
 0x374   : > { %s6431_s24 = smov %s5620_s27  ;;  %18 = sbr.rel (!%p16_p3) target bundleno = 3 (0x3), region = 82 }
 0x37b   :  { %4274 = vsyncpa [#allocation3], 1 }
 0x37c   :  { %4276 = vsyncpa [#allocation3 + $0x1], 1 }

</bundles_post_ra>
